<compile_context>
chip_gen: v6e
topology: v6e:2x2x1
jax: 0.10.0
libtpu: 0.0.40
codegen_flags: <defaults>
</compile_context>

<pallas_src>
import functools

import jax
import jax.numpy as jnp
from jax.experimental import pallas as pl
from jax.experimental.pallas import tpu as pltpu


# ---------------------------------------------------------------------------
# Fused bidirectional LSTM layer kernel.
#   x_ref   : [S*Bp, E_in]  f32   (time-major, batch padded to Bp)
#   wih_ref : [E_in, 8H]    bf16  (fwd gate cols 0:4H, bwd gate cols 4H:8H)
#   whh_f/b : [H, 4H]       bf16
#   b_ref   : [1, 8H]       f32   (b_ih + b_hh, fwd | bwd)
#   y_ref   : [S*Bp, 2H]    f32   (fwd hidden in cols 0:H, bwd in H:2H)
#   hN/cN   : [2, Bp, H]    f32   (index 0 = fwd final, 1 = bwd final)
# Gate order follows PyTorch nn.LSTM: [i, f, g, o].
# ---------------------------------------------------------------------------
def _bilstm_layer_kernel(x_ref, wih_ref, whh_f_ref, whh_b_ref, b_ref,
                         y_ref, hN_ref, cN_ref, g_sc,
                         *, seq_len, batch_p, hidden):
    S, Bp, H = seq_len, batch_p, hidden
    fourH = 4 * H

    # ---- Phase 1: hoisted input projection (both directions, one matmul) ----
    x_bf = x_ref[...].astype(jnp.bfloat16)
    g_sc[...] = (jnp.dot(x_bf, wih_ref[...],
                         preferred_element_type=jnp.float32)
                 + b_ref[...])                           # [S*Bp, 8H]

    # ---- Phase 2: recurrence; fwd (time t) and bwd (time S-1-t) fused ----
    def lstm_cell(gates, c):
        i_g = jax.nn.sigmoid(gates[:, 0 * H:1 * H])
        f_g = jax.nn.sigmoid(gates[:, 1 * H:2 * H])
        g_g = jnp.tanh(gates[:, 2 * H:3 * H])
        o_g = jax.nn.sigmoid(gates[:, 3 * H:4 * H])
        c_new = f_g * c + i_g * g_g
        h_new = o_g * jnp.tanh(c_new)
        return h_new, c_new

    def step(t, carry):
        h_f, c_f, h_b, c_b = carry
        row_f = pl.multiple_of(t * Bp, Bp)
        row_b = pl.multiple_of((S - 1 - t) * Bp, Bp)

        gates_f = (g_sc[pl.ds(row_f, Bp), 0:fourH]
                   + jnp.dot(h_f.astype(jnp.bfloat16), whh_f_ref[...],
                             preferred_element_type=jnp.float32))
        gates_b = (g_sc[pl.ds(row_b, Bp), fourH:2 * fourH]
                   + jnp.dot(h_b.astype(jnp.bfloat16), whh_b_ref[...],
                             preferred_element_type=jnp.float32))

        h_f, c_f = lstm_cell(gates_f, c_f)
        h_b, c_b = lstm_cell(gates_b, c_b)

        y_ref[pl.ds(row_f, Bp), 0:H] = h_f
        y_ref[pl.ds(row_b, Bp), H:2 * H] = h_b
        return h_f, c_f, h_b, c_b

    zeros = jnp.zeros((Bp, H), jnp.float32)
    h_f, c_f, h_b, c_b = jax.lax.fori_loop(
        0, S, step, (zeros, zeros, zeros, zeros), unroll=True)

    # Final states written exactly once, after the loop.
    hN_ref[0, :, :] = h_f
    hN_ref[1, :, :] = h_b
    cN_ref[0, :, :] = c_f
    cN_ref[1, :, :] = c_b


def bilstm_layer(x2d, wih_t, whh_f_t, whh_b_t, bias, *, seq_len, batch_p, hidden):
    """One fused bidirectional LSTM layer.

    x2d: [S*Bp, E_in] time-major. Returns (y [S*Bp, 2H], hN [2,Bp,H], cN [2,Bp,H]).
    """
    S, Bp, H = seq_len, batch_p, hidden
    E_in = x2d.shape[1]

    kernel = functools.partial(_bilstm_layer_kernel,
                               seq_len=S, batch_p=Bp, hidden=H)

    y, hN, cN = pl.pallas_call(
        kernel,
        out_shape=(
            jax.ShapeDtypeStruct((S * Bp, 2 * H), jnp.float32),
            jax.ShapeDtypeStruct((2, Bp, H), jnp.float32),
            jax.ShapeDtypeStruct((2, Bp, H), jnp.float32),
        ),
        grid_spec=pltpu.PrefetchScalarGridSpec(
            num_scalar_prefetch=0,
            grid=(1,),
            in_specs=[
                pl.BlockSpec((S * Bp, E_in), lambda i: (0, 0)),   # x (time-major)
                pl.BlockSpec((E_in, 8 * H), lambda i: (0, 0)),    # [Wih_f^T | Wih_b^T]
                pl.BlockSpec((H, 4 * H), lambda i: (0, 0)),       # Whh_f^T
                pl.BlockSpec((H, 4 * H), lambda i: (0, 0)),       # Whh_b^T
                pl.BlockSpec((1, 8 * H), lambda i: (0, 0)),       # bias (fwd|bwd)
            ],
            out_specs=[
                pl.BlockSpec((S * Bp, 2 * H), lambda i: (0, 0)),  # y (fwd|bwd)
                pl.BlockSpec((2, Bp, H), lambda i: (0, 0, 0)),    # h_N
                pl.BlockSpec((2, Bp, H), lambda i: (0, 0, 0)),    # c_N
            ],
            scratch_shapes=[
                pltpu.VMEM((S * Bp, 8 * H), jnp.float32),         # hoisted gates
            ],
        ),
        compiler_params=pltpu.CompilerParams(
            dimension_semantics=("arbitrary",)),
    )(x2d, wih_t, whh_f_t, whh_b_t, bias)
    return y, hN, cN


# ---------------------------------------------------------------------------
# Fused bridge: both hidden and cell linears in one pallas_call.
# ---------------------------------------------------------------------------
def _bridge_kernel(h_ref, c_ref, wh_ref, bh_ref, wc_ref, bc_ref,
                   oh_ref, oc_ref):
    oh_ref[...] = (jnp.dot(h_ref[...], wh_ref[...],
                           preferred_element_type=jnp.float32) + bh_ref[...])
    oc_ref[...] = (jnp.dot(c_ref[...], wc_ref[...],
                           preferred_element_type=jnp.float32) + bc_ref[...])


def bridge(h, c, wh_t, bh, wc_t, bc):
    """h, c: [M, K]; wh_t/wc_t: [K, N]; bh/bc: [1, N] -> (dec_h, dec_c) [M, N]."""
    M, K = h.shape
    N = wh_t.shape[1]
    return pl.pallas_call(
        _bridge_kernel,
        out_shape=(jax.ShapeDtypeStruct((M, N), jnp.float32),
                   jax.ShapeDtypeStruct((M, N), jnp.float32)),
        grid_spec=pltpu.PrefetchScalarGridSpec(
            num_scalar_prefetch=0,
            grid=(1,),
            in_specs=[
                pl.BlockSpec((M, K), lambda i: (0, 0)),
                pl.BlockSpec((M, K), lambda i: (0, 0)),
                pl.BlockSpec((K, N), lambda i: (0, 0)),
                pl.BlockSpec((1, N), lambda i: (0, 0)),
                pl.BlockSpec((K, N), lambda i: (0, 0)),
                pl.BlockSpec((1, N), lambda i: (0, 0)),
            ],
            out_specs=[
                pl.BlockSpec((M, N), lambda i: (0, 0)),
                pl.BlockSpec((M, N), lambda i: (0, 0)),
            ],
        ),
    )(h, c, wh_t, bh, wc_t, bc)


# ---------------------------------------------------------------------------
# Full Encoder forward (glue in plain JAX, hot path in the kernels above)
# ---------------------------------------------------------------------------
def encoder_forward(token_ids, embedding_table, layer_params,
                    wh_t, bh, wc_t, bc, num_layers, enc_hidden, dec_hidden):
    B, S = token_ids.shape
    Bp = ((B + 7) // 8) * 8                                  # pad to sublane-full

    # embedding lookup (gather) — plain JAX glue
    emb = jnp.take(embedding_table, token_ids, axis=0)       # [B, S, E]
    x = jnp.transpose(emb, (1, 0, 2))                        # time-major [S, B, E]
    x = jnp.pad(x, ((0, 0), (0, Bp - B), (0, 0)))            # [S, Bp, E]
    x2d = x.reshape(S * Bp, x.shape[-1])                     # [S*Bp, E]

    h_list, c_list = [], []
    for (wih_t, whh_f_t, whh_b_t, bias) in layer_params:
        x2d, hN, cN = bilstm_layer(x2d, wih_t, whh_f_t, whh_b_t, bias,
                                   seq_len=S, batch_p=Bp, hidden=enc_hidden)
        h_list.append(hN)                                    # [2, Bp, H]
        c_list.append(cN)

    H = enc_hidden
    memory_bank = (x2d.reshape(S, Bp, 2 * H)
                   .transpose(1, 0, 2)[:B])                  # [B, S, 2H]

    h_n = jnp.stack(h_list, axis=0)[:, :, :B, :]             # [L, 2, B, H]
    c_n = jnp.stack(c_list, axis=0)[:, :, :B, :]
    # cat fwd/bwd per layer along features, mirroring h_n[0::2]/h_n[1::2] in ref
    enc_final_h = jnp.concatenate([h_n[:, 0], h_n[:, 1]], axis=-1)  # [L, B, 2H]
    enc_final_c = jnp.concatenate([c_n[:, 0], c_n[:, 1]], axis=-1)  # [L, B, 2H]

    L = num_layers
    dec_h, dec_c = bridge(enc_final_h.reshape(L * B, 2 * H),
                          enc_final_c.reshape(L * B, 2 * H),
                          wh_t, bh, wc_t, bc)
    dec_h = dec_h.reshape(L, B, dec_hidden)
    dec_c = dec_c.reshape(L, B, dec_hidden)
    return memory_bank, (dec_h, dec_c)


# ---------------------------------------------------------------------------
# Deterministic parameter construction
# ---------------------------------------------------------------------------
def make_params(key, params):
    E = params['embedding_size']
    H = params['encoder_hidden_size']
    Hd = params['decoder_hidden_size']
    L = params['num_encoder_layers']
    V = params['vocab_size']

    keys = iter(jax.random.split(key, 64))
    scale = 0.1

    embedding_table = scale * jax.random.normal(next(keys), (V, E), jnp.float32)

    layer_params = []
    for layer in range(L):
        e_in = E if layer == 0 else 2 * H
        dir_w_ih, dir_w_hh, dir_b = [], [], []
        for _direction in range(2):
            w_ih = scale * jax.random.normal(next(keys), (4 * H, e_in), jnp.float32)
            w_hh = scale * jax.random.normal(next(keys), (4 * H, H), jnp.float32)
            b_ih = scale * jax.random.normal(next(keys), (4 * H,), jnp.float32)
            b_hh = scale * jax.random.normal(next(keys), (4 * H,), jnp.float32)
            dir_w_ih.append(w_ih.T)                 # [e_in, 4H]
            dir_w_hh.append(w_hh.T)                 # [H, 4H]
            dir_b.append(b_ih + b_hh)               # PyTorch sums the two biases
        # combined input-projection weights + biases for both directions (bf16 MXU)
        wih_comb = jnp.concatenate(dir_w_ih, axis=1).astype(jnp.bfloat16)   # [e_in, 8H]
        whh_f = dir_w_hh[0].astype(jnp.bfloat16)
        whh_b = dir_w_hh[1].astype(jnp.bfloat16)
        bias_comb = jnp.concatenate(dir_b).reshape(1, 8 * H)                # f32
        layer_params.append((wih_comb, whh_f, whh_b, bias_comb))

    wh = scale * jax.random.normal(next(keys), (Hd, 2 * H), jnp.float32)
    bh = scale * jax.random.normal(next(keys), (Hd,), jnp.float32)
    wc = scale * jax.random.normal(next(keys), (Hd, 2 * H), jnp.float32)
    bc = scale * jax.random.normal(next(keys), (Hd,), jnp.float32)

    return (embedding_table, layer_params,
            wh.T, bh.reshape(1, Hd), wc.T, bc.reshape(1, Hd))


if __name__ == "__main__":
    params = dict(
        vocab_size=20,
        embedding_size=16,
        encoder_hidden_size=32,
        decoder_hidden_size=32,
        num_encoder_layers=2,
        dropout=0.0,
        VAE=False,
    )
    B, S = 2, 8

    key = jax.random.PRNGKey(0)
    k_tok, k_par = jax.random.split(key)
    token_ids = jax.random.randint(k_tok, (B, S), 0, params['vocab_size'],
                                   dtype=jnp.int32)

    (embedding_table, layer_params,
     wh_t, bh, wc_t, bc) = make_params(k_par, params)

    memory_bank, (dec_h, dec_c) = encoder_forward(
        token_ids, embedding_table, layer_params,
        wh_t, bh, wc_t, bc,
        params['num_encoder_layers'],
        params['encoder_hidden_size'],
        params['decoder_hidden_size'])

    jax.block_until_ready((memory_bank, dec_h, dec_c))

    assert memory_bank.shape == (B, S, 2 * params['encoder_hidden_size'])
    assert dec_h.shape == (params['num_encoder_layers'], B,
                           params['decoder_hidden_size'])
    assert dec_c.shape == dec_h.shape
    print("KERNEL_OK")
</pallas_src>

<mosaic_0001>
module attributes {stable_mosaic.version = 11 : i64} {
  func.func @_bilstm_layer_kernel(%arg0: i32, %arg1: memref<64x16xf32, #tpu.memory_space<vmem>>, %arg2: memref<16x256xbf16, #tpu.memory_space<vmem>>, %arg3: memref<32x128xbf16, #tpu.memory_space<vmem>>, %arg4: memref<32x128xbf16, #tpu.memory_space<vmem>>, %arg5: memref<1x256xf32, #tpu.memory_space<vmem>>, %arg6: memref<64x64xf32, #tpu.memory_space<vmem>>, %arg7: memref<2x8x32xf32, #tpu.memory_space<vmem>>, %arg8: memref<2x8x32xf32, #tpu.memory_space<vmem>>, %arg9: memref<64x256xf32, #tpu.memory_space<vmem>>) attributes {dimension_semantics = [#tpu.dimension_semantics<arbitrary>], iteration_bounds = array<i64: 1>, scalar_prefetch = 0 : i64, scratch_operands = 1 : i64, tpu.core_type = #tpu.core_type<tc>, window_params = [{pipeline_mode = #tpu.pipeline_mode<synchronous>, transform_indices = @transform_0, window_bounds = array<i64: 64, 16>}, {pipeline_mode = #tpu.pipeline_mode<synchronous>, transform_indices = @transform_1, window_bounds = array<i64: 16, 256>}, {pipeline_mode = #tpu.pipeline_mode<synchronous>, transform_indices = @transform_2, window_bounds = array<i64: 32, 128>}, {pipeline_mode = #tpu.pipeline_mode<synchronous>, transform_indices = @transform_3, window_bounds = array<i64: 32, 128>}, {pipeline_mode = #tpu.pipeline_mode<synchronous>, transform_indices = @transform_4, window_bounds = array<i64: 1, 256>}, {pipeline_mode = #tpu.pipeline_mode<synchronous>, transform_indices = @transform_5, window_bounds = array<i64: 64, 64>}, {pipeline_mode = #tpu.pipeline_mode<synchronous>, transform_indices = @transform_6, window_bounds = array<i64: 2, 8, 32>}, {pipeline_mode = #tpu.pipeline_mode<synchronous>, transform_indices = @transform_7, window_bounds = array<i64: 2, 8, 32>}]} {
    %c0 = arith.constant 0 : index
    %c0_0 = arith.constant 0 : index
    %0 = vector.load %arg1[%c0, %c0_0] : memref<64x16xf32, #tpu.memory_space<vmem>>, vector<64x16xf32>
    %1 = arith.truncf %0 : vector<64x16xf32> to vector<64x16xbf16>
    %c0_1 = arith.constant 0 : index
    %c0_2 = arith.constant 0 : index
    %2 = vector.load %arg2[%c0_1, %c0_2] : memref<16x256xbf16, #tpu.memory_space<vmem>>, vector<16x256xbf16>
    %cst = arith.constant dense<0.000000e+00> : vector<64x256xf32>
    %3 = tpu.matmul %1, %2, %cst {dimension_numbers = #tpu.dot_dimension_numbers<[1], [0], [0], [1], [0, 0, 1, 1], [], []>} : vector<64x16xbf16>, vector<16x256xbf16>, vector<64x256xf32> -> vector<64x256xf32>
    %c0_3 = arith.constant 0 : index
    %c0_4 = arith.constant 0 : index
    %4 = vector.load %arg5[%c0_3, %c0_4] : memref<1x256xf32, #tpu.memory_space<vmem>>, vector<1x256xf32>
    %5 = vector.broadcast %4 : vector<1x256xf32> to vector<64x256xf32>
    %6 = arith.addf %3, %5 : vector<64x256xf32>
    %c0_5 = arith.constant 0 : index
    %c0_6 = arith.constant 0 : index
    %7 = vector.load %arg9[%c0_5, %c0_6] : memref<64x256xf32, #tpu.memory_space<vmem>>, vector<64x256xf32>
    tpu.vector_store %arg9[%c0_5, %c0_6], %6 {strides = array<i32>} : memref<64x256xf32, #tpu.memory_space<vmem>>, vector<64x256xf32>,
    %cst_7 = arith.constant 0.000000e+00 : f32
    %8 = vector.broadcast %cst_7 : f32 to vector<8x32xf32>
    %c0_i32 = arith.constant 0 : i32
    %c8_i32 = arith.constant 8 : i32
    %9 = arith.muli %c0_i32, %c8_i32 : i32
    %10 = tpu.assume_multiple %9, 8 : i32
    %c7_i32 = arith.constant 7 : i32
    %11 = arith.subi %c7_i32, %c0_i32 : i32
    %c8_i32_8 = arith.constant 8 : i32
    %12 = arith.muli %11, %c8_i32_8 : i32
    %13 = tpu.assume_multiple %12, 8 : i32
    %14 = arith.index_cast %10 : i32 to index
    %c0_9 = arith.constant 0 : index
    %15 = vector.load %arg9[%14, %c0_9] : memref<64x256xf32, #tpu.memory_space<vmem>>, vector<8x128xf32>
    %16 = arith.truncf %8 : vector<8x32xf32> to vector<8x32xbf16>
    %c0_10 = arith.constant 0 : index
    %c0_11 = arith.constant 0 : index
    %17 = vector.load %arg3[%c0_10, %c0_11] : memref<32x128xbf16, #tpu.memory_space<vmem>>, vector<32x128xbf16>
    %cst_12 = arith.constant dense<0.000000e+00> : vector<8x128xf32>
    %18 = tpu.matmul %16, %17, %cst_12 {dimension_numbers = #tpu.dot_dimension_numbers<[1], [0], [0], [1], [0, 0, 1, 1], [], []>} : vector<8x32xbf16>, vector<32x128xbf16>, vector<8x128xf32> -> vector<8x128xf32>
    %19 = arith.addf %15, %18 : vector<8x128xf32>
    %20 = arith.index_cast %13 : i32 to index
    %c128 = arith.constant 128 : index
    %21 = vector.load %arg9[%20, %c128] : memref<64x256xf32, #tpu.memory_space<vmem>>, vector<8x128xf32>
    %22 = arith.truncf %8 : vector<8x32xf32> to vector<8x32xbf16>
    %c0_13 = arith.constant 0 : index
    %c0_14 = arith.constant 0 : index
    %23 = vector.load %arg4[%c0_13, %c0_14] : memref<32x128xbf16, #tpu.memory_space<vmem>>, vector<32x128xbf16>
    %cst_15 = arith.constant dense<0.000000e+00> : vector<8x128xf32>
    %24 = tpu.matmul %22, %23, %cst_15 {dimension_numbers = #tpu.dot_dimension_numbers<[1], [0], [0], [1], [0, 0, 1, 1], [], []>} : vector<8x32xbf16>, vector<32x128xbf16>, vector<8x128xf32> -> vector<8x128xf32>
    %25 = arith.addf %21, %24 : vector<8x128xf32>
    %26 = vector.extract_strided_slice %19 {offsets = [0, 0], sizes = [8, 32], strides = [1, 1]} : vector<8x128xf32> to vector<8x32xf32>
    %27 = arith.negf %26 : vector<8x32xf32>
    %28 = math.exp %27 : vector<8x32xf32>
    %cst_16 = arith.constant 1.000000e+00 : f32
    %29 = vector.broadcast %cst_16 : f32 to vector<8x32xf32>
    %30 = arith.addf %29, %28 : vector<8x32xf32>
    %31 = arith.divf %29, %30 : vector<8x32xf32>
    %32 = vector.extract_strided_slice %19 {offsets = [0, 32], sizes = [8, 32], strides = [1, 1]} : vector<8x128xf32> to vector<8x32xf32>
    %33 = arith.negf %32 : vector<8x32xf32>
    %34 = math.exp %33 : vector<8x32xf32>
    %cst_17 = arith.constant 1.000000e+00 : f32
    %35 = vector.broadcast %cst_17 : f32 to vector<8x32xf32>
    %36 = arith.addf %35, %34 : vector<8x32xf32>
    %37 = arith.divf %35, %36 : vector<8x32xf32>
    %38 = vector.extract_strided_slice %19 {offsets = [0, 64], sizes = [8, 32], strides = [1, 1]} : vector<8x128xf32> to vector<8x32xf32>
    %39 = math.tanh %38 : vector<8x32xf32>
    %40 = vector.extract_strided_slice %19 {offsets = [0, 96], sizes = [8, 32], strides = [1, 1]} : vector<8x128xf32> to vector<8x32xf32>
    %41 = arith.negf %40 : vector<8x32xf32>
    %42 = math.exp %41 : vector<8x32xf32>
    %cst_18 = arith.constant 1.000000e+00 : f32
    %43 = vector.broadcast %cst_18 : f32 to vector<8x32xf32>
    %44 = arith.addf %43, %42 : vector<8x32xf32>
    %45 = arith.divf %43, %44 : vector<8x32xf32>
    %46 = arith.mulf %37, %8 : vector<8x32xf32>
    %47 = arith.mulf %31, %39 : vector<8x32xf32>
    %48 = arith.addf %46, %47 : vector<8x32xf32>
    %49 = math.tanh %48 : vector<8x32xf32>
    %50 = arith.mulf %45, %49 : vector<8x32xf32>
    %51 = vector.extract_strided_slice %25 {offsets = [0, 0], sizes = [8, 32], strides = [1, 1]} : vector<8x128xf32> to vector<8x32xf32>
    %52 = arith.negf %51 : vector<8x32xf32>
    %53 = math.exp %52 : vector<8x32xf32>
    %cst_19 = arith.constant 1.000000e+00 : f32
    %54 = vector.broadcast %cst_19 : f32 to vector<8x32xf32>
    %55 = arith.addf %54, %53 : vector<8x32xf32>
    %56 = arith.divf %54, %55 : vector<8x32xf32>
    %57 = vector.extract_strided_slice %25 {offsets = [0, 32], sizes = [8, 32], strides = [1, 1]} : vector<8x128xf32> to vector<8x32xf32>
    %58 = arith.negf %57 : vector<8x32xf32>
    %59 = math.exp %58 : vector<8x32xf32>
    %cst_20 = arith.constant 1.000000e+00 : f32
    %60 = vector.broadcast %cst_20 : f32 to vector<8x32xf32>
    %61 = arith.addf %60, %59 : vector<8x32xf32>
    %62 = arith.divf %60, %61 : vector<8x32xf32>
    %63 = vector.extract_strided_slice %25 {offsets = [0, 64], sizes = [8, 32], strides = [1, 1]} : vector<8x128xf32> to vector<8x32xf32>
    %64 = math.tanh %63 : vector<8x32xf32>
    %65 = vector.extract_strided_slice %25 {offsets = [0, 96], sizes = [8, 32], strides = [1, 1]} : vector<8x128xf32> to vector<8x32xf32>
    %66 = arith.negf %65 : vector<8x32xf32>
    %67 = math.exp %66 : vector<8x32xf32>
    %cst_21 = arith.constant 1.000000e+00 : f32
    %68 = vector.broadcast %cst_21 : f32 to vector<8x32xf32>
    %69 = arith.addf %68, %67 : vector<8x32xf32>
    %70 = arith.divf %68, %69 : vector<8x32xf32>
    %71 = arith.mulf %62, %8 : vector<8x32xf32>
    %72 = arith.mulf %56, %64 : vector<8x32xf32>
    %73 = arith.addf %71, %72 : vector<8x32xf32>
    %74 = math.tanh %73 : vector<8x32xf32>
    %75 = arith.mulf %70, %74 : vector<8x32xf32>
    %76 = arith.index_cast %10 : i32 to index
    %c0_22 = arith.constant 0 : index
    %77 = vector.load %arg6[%76, %c0_22] : memref<64x64xf32, #tpu.memory_space<vmem>>, vector<8x32xf32>
    tpu.vector_store %arg6[%76, %c0_22], %50 {strides = array<i32>} : memref<64x64xf32, #tpu.memory_space<vmem>>, vector<8x32xf32>,
    %78 = arith.index_cast %13 : i32 to index
    %c32 = arith.constant 32 : index
    %79 = vector.load %arg6[%78, %c32] : memref<64x64xf32, #tpu.memory_space<vmem>>, vector<8x32xf32>
    tpu.vector_store %arg6[%78, %c32], %75 {strides = array<i32>} : memref<64x64xf32, #tpu.memory_space<vmem>>, vector<8x32xf32>,
    %c1_i32 = arith.constant 1 : i32
    %c8_i32_23 = arith.constant 8 : i32
    %80 = arith.muli %c1_i32, %c8_i32_23 : i32
    %81 = tpu.assume_multiple %80, 8 : i32
    %c7_i32_24 = arith.constant 7 : i32
    %82 = arith.subi %c7_i32_24, %c1_i32 : i32
    %c8_i32_25 = arith.constant 8 : i32
    %83 = arith.muli %82, %c8_i32_25 : i32
    %84 = tpu.assume_multiple %83, 8 : i32
    %85 = arith.index_cast %81 : i32 to index
    %c0_26 = arith.constant 0 : index
    %86 = vector.load %arg9[%85, %c0_26] : memref<64x256xf32, #tpu.memory_space<vmem>>, vector<8x128xf32>
    %87 = arith.truncf %50 : vector<8x32xf32> to vector<8x32xbf16>
    %c0_27 = arith.constant 0 : index
    %c0_28 = arith.constant 0 : index
    %88 = vector.load %arg3[%c0_27, %c0_28] : memref<32x128xbf16, #tpu.memory_space<vmem>>, vector<32x128xbf16>
    %cst_29 = arith.constant dense<0.000000e+00> : vector<8x128xf32>
    %89 = tpu.matmul %87, %88, %cst_29 {dimension_numbers = #tpu.dot_dimension_numbers<[1], [0], [0], [1], [0, 0, 1, 1], [], []>} : vector<8x32xbf16>, vector<32x128xbf16>, vector<8x128xf32> -> vector<8x128xf32>
    %90 = arith.addf %86, %89 : vector<8x128xf32>
    %91 = arith.index_cast %84 : i32 to index
    %c128_30 = arith.constant 128 : index
    %92 = vector.load %arg9[%91, %c128_30] : memref<64x256xf32, #tpu.memory_space<vmem>>, vector<8x128xf32>
    %93 = arith.truncf %75 : vector<8x32xf32> to vector<8x32xbf16>
    %c0_31 = arith.constant 0 : index
    %c0_32 = arith.constant 0 : index
    %94 = vector.load %arg4[%c0_31, %c0_32] : memref<32x128xbf16, #tpu.memory_space<vmem>>, vector<32x128xbf16>
    %cst_33 = arith.constant dense<0.000000e+00> : vector<8x128xf32>
    %95 = tpu.matmul %93, %94, %cst_33 {dimension_numbers = #tpu.dot_dimension_numbers<[1], [0], [0], [1], [0, 0, 1, 1], [], []>} : vector<8x32xbf16>, vector<32x128xbf16>, vector<8x128xf32> -> vector<8x128xf32>
    %96 = arith.addf %92, %95 : vector<8x128xf32>
    %97 = vector.extract_strided_slice %90 {offsets = [0, 0], sizes = [8, 32], strides = [1, 1]} : vector<8x128xf32> to vector<8x32xf32>
    %98 = arith.negf %97 : vector<8x32xf32>
    %99 = math.exp %98 : vector<8x32xf32>
    %cst_34 = arith.constant 1.000000e+00 : f32
    %100 = vector.broadcast %cst_34 : f32 to vector<8x32xf32>
    %101 = arith.addf %100, %99 : vector<8x32xf32>
    %102 = arith.divf %100, %101 : vector<8x32xf32>
    %103 = vector.extract_strided_slice %90 {offsets = [0, 32], sizes = [8, 32], strides = [1, 1]} : vector<8x128xf32> to vector<8x32xf32>
    %104 = arith.negf %103 : vector<8x32xf32>
    %105 = math.exp %104 : vector<8x32xf32>
    %cst_35 = arith.constant 1.000000e+00 : f32
    %106 = vector.broadcast %cst_35 : f32 to vector<8x32xf32>
    %107 = arith.addf %106, %105 : vector<8x32xf32>
    %108 = arith.divf %106, %107 : vector<8x32xf32>
    %109 = vector.extract_strided_slice %90 {offsets = [0, 64], sizes = [8, 32], strides = [1, 1]} : vector<8x128xf32> to vector<8x32xf32>
    %110 = math.tanh %109 : vector<8x32xf32>
    %111 = vector.extract_strided_slice %90 {offsets = [0, 96], sizes = [8, 32], strides = [1, 1]} : vector<8x128xf32> to vector<8x32xf32>
    %112 = arith.negf %111 : vector<8x32xf32>
    %113 = math.exp %112 : vector<8x32xf32>
    %cst_36 = arith.constant 1.000000e+00 : f32
    %114 = vector.broadcast %cst_36 : f32 to vector<8x32xf32>
    %115 = arith.addf %114, %113 : vector<8x32xf32>
    %116 = arith.divf %114, %115 : vector<8x32xf32>
    %117 = arith.mulf %108, %48 : vector<8x32xf32>
    %118 = arith.mulf %102, %110 : vector<8x32xf32>
    %119 = arith.addf %117, %118 : vector<8x32xf32>
    %120 = math.tanh %119 : vector<8x32xf32>
    %121 = arith.mulf %116, %120 : vector<8x32xf32>
    %122 = vector.extract_strided_slice %96 {offsets = [0, 0], sizes = [8, 32], strides = [1, 1]} : vector<8x128xf32> to vector<8x32xf32>
    %123 = arith.negf %122 : vector<8x32xf32>
    %124 = math.exp %123 : vector<8x32xf32>
    %cst_37 = arith.constant 1.000000e+00 : f32
    %125 = vector.broadcast %cst_37 : f32 to vector<8x32xf32>
    %126 = arith.addf %125, %124 : vector<8x32xf32>
    %127 = arith.divf %125, %126 : vector<8x32xf32>
    %128 = vector.extract_strided_slice %96 {offsets = [0, 32], sizes = [8, 32], strides = [1, 1]} : vector<8x128xf32> to vector<8x32xf32>
    %129 = arith.negf %128 : vector<8x32xf32>
    %130 = math.exp %129 : vector<8x32xf32>
    %cst_38 = arith.constant 1.000000e+00 : f32
    %131 = vector.broadcast %cst_38 : f32 to vector<8x32xf32>
    %132 = arith.addf %131, %130 : vector<8x32xf32>
    %133 = arith.divf %131, %132 : vector<8x32xf32>
    %134 = vector.extract_strided_slice %96 {offsets = [0, 64], sizes = [8, 32], strides = [1, 1]} : vector<8x128xf32> to vector<8x32xf32>
    %135 = math.tanh %134 : vector<8x32xf32>
    %136 = vector.extract_strided_slice %96 {offsets = [0, 96], sizes = [8, 32], strides = [1, 1]} : vector<8x128xf32> to vector<8x32xf32>
    %137 = arith.negf %136 : vector<8x32xf32>
    %138 = math.exp %137 : vector<8x32xf32>
    %cst_39 = arith.constant 1.000000e+00 : f32
    %139 = vector.broadcast %cst_39 : f32 to vector<8x32xf32>
    %140 = arith.addf %139, %138 : vector<8x32xf32>
    %141 = arith.divf %139, %140 : vector<8x32xf32>
    %142 = arith.mulf %133, %73 : vector<8x32xf32>
    %143 = arith.mulf %127, %135 : vector<8x32xf32>
    %144 = arith.addf %142, %143 : vector<8x32xf32>
    %145 = math.tanh %144 : vector<8x32xf32>
    %146 = arith.mulf %141, %145 : vector<8x32xf32>
    %147 = arith.index_cast %81 : i32 to index
    %c0_40 = arith.constant 0 : index
    %148 = vector.load %arg6[%147, %c0_40] : memref<64x64xf32, #tpu.memory_space<vmem>>, vector<8x32xf32>
    tpu.vector_store %arg6[%147, %c0_40], %121 {strides = array<i32>} : memref<64x64xf32, #tpu.memory_space<vmem>>, vector<8x32xf32>,
    %149 = arith.index_cast %84 : i32 to index
    %c32_41 = arith.constant 32 : index
    %150 = vector.load %arg6[%149, %c32_41] : memref<64x64xf32, #tpu.memory_space<vmem>>, vector<8x32xf32>
    tpu.vector_store %arg6[%149, %c32_41], %146 {strides = array<i32>} : memref<64x64xf32, #tpu.memory_space<vmem>>, vector<8x32xf32>,
    %c2_i32 = arith.constant 2 : i32
    %c8_i32_42 = arith.constant 8 : i32
    %151 = arith.muli %c2_i32, %c8_i32_42 : i32
    %152 = tpu.assume_multiple %151, 8 : i32
    %c7_i32_43 = arith.constant 7 : i32
    %153 = arith.subi %c7_i32_43, %c2_i32 : i32
    %c8_i32_44 = arith.constant 8 : i32
    %154 = arith.muli %153, %c8_i32_44 : i32
    %155 = tpu.assume_multiple %154, 8 : i32
    %156 = arith.index_cast %152 : i32 to index
    %c0_45 = arith.constant 0 : index
    %157 = vector.load %arg9[%156, %c0_45] : memref<64x256xf32, #tpu.memory_space<vmem>>, vector<8x128xf32>
    %158 = arith.truncf %121 : vector<8x32xf32> to vector<8x32xbf16>
    %c0_46 = arith.constant 0 : index
    %c0_47 = arith.constant 0 : index
    %159 = vector.load %arg3[%c0_46, %c0_47] : memref<32x128xbf16, #tpu.memory_space<vmem>>, vector<32x128xbf16>
    %cst_48 = arith.constant dense<0.000000e+00> : vector<8x128xf32>
    %160 = tpu.matmul %158, %159, %cst_48 {dimension_numbers = #tpu.dot_dimension_numbers<[1], [0], [0], [1], [0, 0, 1, 1], [], []>} : vector<8x32xbf16>, vector<32x128xbf16>, vector<8x128xf32> -> vector<8x128xf32>
    %161 = arith.addf %157, %160 : vector<8x128xf32>
    %162 = arith.index_cast %155 : i32 to index
    %c128_49 = arith.constant 128 : index
    %163 = vector.load %arg9[%162, %c128_49] : memref<64x256xf32, #tpu.memory_space<vmem>>, vector<8x128xf32>
    %164 = arith.truncf %146 : vector<8x32xf32> to vector<8x32xbf16>
    %c0_50 = arith.constant 0 : index
    %c0_51 = arith.constant 0 : index
    %165 = vector.load %arg4[%c0_50, %c0_51] : memref<32x128xbf16, #tpu.memory_space<vmem>>, vector<32x128xbf16>
    %cst_52 = arith.constant dense<0.000000e+00> : vector<8x128xf32>
    %166 = tpu.matmul %164, %165, %cst_52 {dimension_numbers = #tpu.dot_dimension_numbers<[1], [0], [0], [1], [0, 0, 1, 1], [], []>} : vector<8x32xbf16>, vector<32x128xbf16>, vector<8x128xf32> -> vector<8x128xf32>
    %167 = arith.addf %163, %166 : vector<8x128xf32>
    %168 = vector.extract_strided_slice %161 {offsets = [0, 0], sizes = [8, 32], strides = [1, 1]} : vector<8x128xf32> to vector<8x32xf32>
    %169 = arith.negf %168 : vector<8x32xf32>
    %170 = math.exp %169 : vector<8x32xf32>
    %cst_53 = arith.constant 1.000000e+00 : f32
    %171 = vector.broadcast %cst_53 : f32 to vector<8x32xf32>
    %172 = arith.addf %171, %170 : vector<8x32xf32>
    %173 = arith.divf %171, %172 : vector<8x32xf32>
    %174 = vector.extract_strided_slice %161 {offsets = [0, 32], sizes = [8, 32], strides = [1, 1]} : vector<8x128xf32> to vector<8x32xf32>
    %175 = arith.negf %174 : vector<8x32xf32>
    %176 = math.exp %175 : vector<8x32xf32>
    %cst_54 = arith.constant 1.000000e+00 : f32
    %177 = vector.broadcast %cst_54 : f32 to vector<8x32xf32>
    %178 = arith.addf %177, %176 : vector<8x32xf32>
    %179 = arith.divf %177, %178 : vector<8x32xf32>
    %180 = vector.extract_strided_slice %161 {offsets = [0, 64], sizes = [8, 32], strides = [1, 1]} : vector<8x128xf32> to vector<8x32xf32>
    %181 = math.tanh %180 : vector<8x32xf32>
    %182 = vector.extract_strided_slice %161 {offsets = [0, 96], sizes = [8, 32], strides = [1, 1]} : vector<8x128xf32> to vector<8x32xf32>
    %183 = arith.negf %182 : vector<8x32xf32>
    %184 = math.exp %183 : vector<8x32xf32>
    %cst_55 = arith.constant 1.000000e+00 : f32
    %185 = vector.broadcast %cst_55 : f32 to vector<8x32xf32>
    %186 = arith.addf %185, %184 : vector<8x32xf32>
    %187 = arith.divf %185, %186 : vector<8x32xf32>
    %188 = arith.mulf %179, %119 : vector<8x32xf32>
    %189 = arith.mulf %173, %181 : vector<8x32xf32>
    %190 = arith.addf %188, %189 : vector<8x32xf32>
    %191 = math.tanh %190 : vector<8x32xf32>
    %192 = arith.mulf %187, %191 : vector<8x32xf32>
    %193 = vector.extract_strided_slice %167 {offsets = [0, 0], sizes = [8, 32], strides = [1, 1]} : vector<8x128xf32> to vector<8x32xf32>
    %194 = arith.negf %193 : vector<8x32xf32>
    %195 = math.exp %194 : vector<8x32xf32>
    %cst_56 = arith.constant 1.000000e+00 : f32
    %196 = vector.broadcast %cst_56 : f32 to vector<8x32xf32>
    %197 = arith.addf %196, %195 : vector<8x32xf32>
    %198 = arith.divf %196, %197 : vector<8x32xf32>
    %199 = vector.extract_strided_slice %167 {offsets = [0, 32], sizes = [8, 32], strides = [1, 1]} : vector<8x128xf32> to vector<8x32xf32>
    %200 = arith.negf %199 : vector<8x32xf32>
    %201 = math.exp %200 : vector<8x32xf32>
    %cst_57 = arith.constant 1.000000e+00 : f32
    %202 = vector.broadcast %cst_57 : f32 to vector<8x32xf32>
    %203 = arith.addf %202, %201 : vector<8x32xf32>
    %204 = arith.divf %202, %203 : vector<8x32xf32>
    %205 = vector.extract_strided_slice %167 {offsets = [0, 64], sizes = [8, 32], strides = [1, 1]} : vector<8x128xf32> to vector<8x32xf32>
    %206 = math.tanh %205 : vector<8x32xf32>
    %207 = vector.extract_strided_slice %167 {offsets = [0, 96], sizes = [8, 32], strides = [1, 1]} : vector<8x128xf32> to vector<8x32xf32>
    %208 = arith.negf %207 : vector<8x32xf32>
    %209 = math.exp %208 : vector<8x32xf32>
    %cst_58 = arith.constant 1.000000e+00 : f32
    %210 = vector.broadcast %cst_58 : f32 to vector<8x32xf32>
    %211 = arith.addf %210, %209 : vector<8x32xf32>
    %212 = arith.divf %210, %211 : vector<8x32xf32>
    %213 = arith.mulf %204, %144 : vector<8x32xf32>
    %214 = arith.mulf %198, %206 : vector<8x32xf32>
    %215 = arith.addf %213, %214 : vector<8x32xf32>
    %216 = math.tanh %215 : vector<8x32xf32>
    %217 = arith.mulf %212, %216 : vector<8x32xf32>
    %218 = arith.index_cast %152 : i32 to index
    %c0_59 = arith.constant 0 : index
    %219 = vector.load %arg6[%218, %c0_59] : memref<64x64xf32, #tpu.memory_space<vmem>>, vector<8x32xf32>
    tpu.vector_store %arg6[%218, %c0_59], %192 {strides = array<i32>} : memref<64x64xf32, #tpu.memory_space<vmem>>, vector<8x32xf32>,
    %220 = arith.index_cast %155 : i32 to index
    %c32_60 = arith.constant 32 : index
    %221 = vector.load %arg6[%220, %c32_60] : memref<64x64xf32, #tpu.memory_space<vmem>>, vector<8x32xf32>
    tpu.vector_store %arg6[%220, %c32_60], %217 {strides = array<i32>} : memref<64x64xf32, #tpu.memory_space<vmem>>, vector<8x32xf32>,
    %c3_i32 = arith.constant 3 : i32
    %c8_i32_61 = arith.constant 8 : i32
    %222 = arith.muli %c3_i32, %c8_i32_61 : i32
    %223 = tpu.assume_multiple %222, 8 : i32
    %c7_i32_62 = arith.constant 7 : i32
    %224 = arith.subi %c7_i32_62, %c3_i32 : i32
    %c8_i32_63 = arith.constant 8 : i32
    %225 = arith.muli %224, %c8_i32_63 : i32
    %226 = tpu.assume_multiple %225, 8 : i32
    %227 = arith.index_cast %223 : i32 to index
    %c0_64 = arith.constant 0 : index
    %228 = vector.load %arg9[%227, %c0_64] : memref<64x256xf32, #tpu.memory_space<vmem>>, vector<8x128xf32>
    %229 = arith.truncf %192 : vector<8x32xf32> to vector<8x32xbf16>
    %c0_65 = arith.constant 0 : index
    %c0_66 = arith.constant 0 : index
    %230 = vector.load %arg3[%c0_65, %c0_66] : memref<32x128xbf16, #tpu.memory_space<vmem>>, vector<32x128xbf16>
    %cst_67 = arith.constant dense<0.000000e+00> : vector<8x128xf32>
    %231 = tpu.matmul %229, %230, %cst_67 {dimension_numbers = #tpu.dot_dimension_numbers<[1], [0], [0], [1], [0, 0, 1, 1], [], []>} : vector<8x32xbf16>, vector<32x128xbf16>, vector<8x128xf32> -> vector<8x128xf32>
    %232 = arith.addf %228, %231 : vector<8x128xf32>
    %233 = arith.index_cast %226 : i32 to index
    %c128_68 = arith.constant 128 : index
    %234 = vector.load %arg9[%233, %c128_68] : memref<64x256xf32, #tpu.memory_space<vmem>>, vector<8x128xf32>
    %235 = arith.truncf %217 : vector<8x32xf32> to vector<8x32xbf16>
    %c0_69 = arith.constant 0 : index
    %c0_70 = arith.constant 0 : index
    %236 = vector.load %arg4[%c0_69, %c0_70] : memref<32x128xbf16, #tpu.memory_space<vmem>>, vector<32x128xbf16>
    %cst_71 = arith.constant dense<0.000000e+00> : vector<8x128xf32>
    %237 = tpu.matmul %235, %236, %cst_71 {dimension_numbers = #tpu.dot_dimension_numbers<[1], [0], [0], [1], [0, 0, 1, 1], [], []>} : vector<8x32xbf16>, vector<32x128xbf16>, vector<8x128xf32> -> vector<8x128xf32>
    %238 = arith.addf %234, %237 : vector<8x128xf32>
    %239 = vector.extract_strided_slice %232 {offsets = [0, 0], sizes = [8, 32], strides = [1, 1]} : vector<8x128xf32> to vector<8x32xf32>
    %240 = arith.negf %239 : vector<8x32xf32>
    %241 = math.exp %240 : vector<8x32xf32>
    %cst_72 = arith.constant 1.000000e+00 : f32
    %242 = vector.broadcast %cst_72 : f32 to vector<8x32xf32>
    %243 = arith.addf %242, %241 : vector<8x32xf32>
    %244 = arith.divf %242, %243 : vector<8x32xf32>
    %245 = vector.extract_strided_slice %232 {offsets = [0, 32], sizes = [8, 32], strides = [1, 1]} : vector<8x128xf32> to vector<8x32xf32>
    %246 = arith.negf %245 : vector<8x32xf32>
    %247 = math.exp %246 : vector<8x32xf32>
    %cst_73 = arith.constant 1.000000e+00 : f32
    %248 = vector.broadcast %cst_73 : f32 to vector<8x32xf32>
    %249 = arith.addf %248, %247 : vector<8x32xf32>
    %250 = arith.divf %248, %249 : vector<8x32xf32>
    %251 = vector.extract_strided_slice %232 {offsets = [0, 64], sizes = [8, 32], strides = [1, 1]} : vector<8x128xf32> to vector<8x32xf32>
    %252 = math.tanh %251 : vector<8x32xf32>
    %253 = vector.extract_strided_slice %232 {offsets = [0, 96], sizes = [8, 32], strides = [1, 1]} : vector<8x128xf32> to vector<8x32xf32>
    %254 = arith.negf %253 : vector<8x32xf32>
    %255 = math.exp %254 : vector<8x32xf32>
    %cst_74 = arith.constant 1.000000e+00 : f32
    %256 = vector.broadcast %cst_74 : f32 to vector<8x32xf32>
    %257 = arith.addf %256, %255 : vector<8x32xf32>
    %258 = arith.divf %256, %257 : vector<8x32xf32>
    %259 = arith.mulf %250, %190 : vector<8x32xf32>
    %260 = arith.mulf %244, %252 : vector<8x32xf32>
    %261 = arith.addf %259, %260 : vector<8x32xf32>
    %262 = math.tanh %261 : vector<8x32xf32>
    %263 = arith.mulf %258, %262 : vector<8x32xf32>
    %264 = vector.extract_strided_slice %238 {offsets = [0, 0], sizes = [8, 32], strides = [1, 1]} : vector<8x128xf32> to vector<8x32xf32>
    %265 = arith.negf %264 : vector<8x32xf32>
    %266 = math.exp %265 : vector<8x32xf32>
    %cst_75 = arith.constant 1.000000e+00 : f32
    %267 = vector.broadcast %cst_75 : f32 to vector<8x32xf32>
    %268 = arith.addf %267, %266 : vector<8x32xf32>
    %269 = arith.divf %267, %268 : vector<8x32xf32>
    %270 = vector.extract_strided_slice %238 {offsets = [0, 32], sizes = [8, 32], strides = [1, 1]} : vector<8x128xf32> to vector<8x32xf32>
    %271 = arith.negf %270 : vector<8x32xf32>
    %272 = math.exp %271 : vector<8x32xf32>
    %cst_76 = arith.constant 1.000000e+00 : f32
    %273 = vector.broadcast %cst_76 : f32 to vector<8x32xf32>
    %274 = arith.addf %273, %272 : vector<8x32xf32>
    %275 = arith.divf %273, %274 : vector<8x32xf32>
    %276 = vector.extract_strided_slice %238 {offsets = [0, 64], sizes = [8, 32], strides = [1, 1]} : vector<8x128xf32> to vector<8x32xf32>
    %277 = math.tanh %276 : vector<8x32xf32>
    %278 = vector.extract_strided_slice %238 {offsets = [0, 96], sizes = [8, 32], strides = [1, 1]} : vector<8x128xf32> to vector<8x32xf32>
    %279 = arith.negf %278 : vector<8x32xf32>
    %280 = math.exp %279 : vector<8x32xf32>
    %cst_77 = arith.constant 1.000000e+00 : f32
    %281 = vector.broadcast %cst_77 : f32 to vector<8x32xf32>
    %282 = arith.addf %281, %280 : vector<8x32xf32>
    %283 = arith.divf %281, %282 : vector<8x32xf32>
    %284 = arith.mulf %275, %215 : vector<8x32xf32>
    %285 = arith.mulf %269, %277 : vector<8x32xf32>
    %286 = arith.addf %284, %285 : vector<8x32xf32>
    %287 = math.tanh %286 : vector<8x32xf32>
    %288 = arith.mulf %283, %287 : vector<8x32xf32>
    %289 = arith.index_cast %223 : i32 to index
    %c0_78 = arith.constant 0 : index
    %290 = vector.load %arg6[%289, %c0_78] : memref<64x64xf32, #tpu.memory_space<vmem>>, vector<8x32xf32>
    tpu.vector_store %arg6[%289, %c0_78], %263 {strides = array<i32>} : memref<64x64xf32, #tpu.memory_space<vmem>>, vector<8x32xf32>,
    %291 = arith.index_cast %226 : i32 to index
    %c32_79 = arith.constant 32 : index
    %292 = vector.load %arg6[%291, %c32_79] : memref<64x64xf32, #tpu.memory_space<vmem>>, vector<8x32xf32>
    tpu.vector_store %arg6[%291, %c32_79], %288 {strides = array<i32>} : memref<64x64xf32, #tpu.memory_space<vmem>>, vector<8x32xf32>,
    %c4_i32 = arith.constant 4 : i32
    %c8_i32_80 = arith.constant 8 : i32
    %293 = arith.muli %c4_i32, %c8_i32_80 : i32
    %294 = tpu.assume_multiple %293, 8 : i32
    %c7_i32_81 = arith.constant 7 : i32
    %295 = arith.subi %c7_i32_81, %c4_i32 : i32
    %c8_i32_82 = arith.constant 8 : i32
    %296 = arith.muli %295, %c8_i32_82 : i32
    %297 = tpu.assume_multiple %296, 8 : i32
    %298 = arith.index_cast %294 : i32 to index
    %c0_83 = arith.constant 0 : index
    %299 = vector.load %arg9[%298, %c0_83] : memref<64x256xf32, #tpu.memory_space<vmem>>, vector<8x128xf32>
    %300 = arith.truncf %263 : vector<8x32xf32> to vector<8x32xbf16>
    %c0_84 = arith.constant 0 : index
    %c0_85 = arith.constant 0 : index
    %301 = vector.load %arg3[%c0_84, %c0_85] : memref<32x128xbf16, #tpu.memory_space<vmem>>, vector<32x128xbf16>
    %cst_86 = arith.constant dense<0.000000e+00> : vector<8x128xf32>
    %302 = tpu.matmul %300, %301, %cst_86 {dimension_numbers = #tpu.dot_dimension_numbers<[1], [0], [0], [1], [0, 0, 1, 1], [], []>} : vector<8x32xbf16>, vector<32x128xbf16>, vector<8x128xf32> -> vector<8x128xf32>
    %303 = arith.addf %299, %302 : vector<8x128xf32>
    %304 = arith.index_cast %297 : i32 to index
    %c128_87 = arith.constant 128 : index
    %305 = vector.load %arg9[%304, %c128_87] : memref<64x256xf32, #tpu.memory_space<vmem>>, vector<8x128xf32>
    %306 = arith.truncf %288 : vector<8x32xf32> to vector<8x32xbf16>
    %c0_88 = arith.constant 0 : index
    %c0_89 = arith.constant 0 : index
    %307 = vector.load %arg4[%c0_88, %c0_89] : memref<32x128xbf16, #tpu.memory_space<vmem>>, vector<32x128xbf16>
    %cst_90 = arith.constant dense<0.000000e+00> : vector<8x128xf32>
    %308 = tpu.matmul %306, %307, %cst_90 {dimension_numbers = #tpu.dot_dimension_numbers<[1], [0], [0], [1], [0, 0, 1, 1], [], []>} : vector<8x32xbf16>, vector<32x128xbf16>, vector<8x128xf32> -> vector<8x128xf32>
    %309 = arith.addf %305, %308 : vector<8x128xf32>
    %310 = vector.extract_strided_slice %303 {offsets = [0, 0], sizes = [8, 32], strides = [1, 1]} : vector<8x128xf32> to vector<8x32xf32>
    %311 = arith.negf %310 : vector<8x32xf32>
    %312 = math.exp %311 : vector<8x32xf32>
    %cst_91 = arith.constant 1.000000e+00 : f32
    %313 = vector.broadcast %cst_91 : f32 to vector<8x32xf32>
    %314 = arith.addf %313, %312 : vector<8x32xf32>
    %315 = arith.divf %313, %314 : vector<8x32xf32>
    %316 = vector.extract_strided_slice %303 {offsets = [0, 32], sizes = [8, 32], strides = [1, 1]} : vector<8x128xf32> to vector<8x32xf32>
    %317 = arith.negf %316 : vector<8x32xf32>
    %318 = math.exp %317 : vector<8x32xf32>
    %cst_92 = arith.constant 1.000000e+00 : f32
    %319 = vector.broadcast %cst_92 : f32 to vector<8x32xf32>
    %320 = arith.addf %319, %318 : vector<8x32xf32>
    %321 = arith.divf %319, %320 : vector<8x32xf32>
    %322 = vector.extract_strided_slice %303 {offsets = [0, 64], sizes = [8, 32], strides = [1, 1]} : vector<8x128xf32> to vector<8x32xf32>
    %323 = math.tanh %322 : vector<8x32xf32>
    %324 = vector.extract_strided_slice %303 {offsets = [0, 96], sizes = [8, 32], strides = [1, 1]} : vector<8x128xf32> to vector<8x32xf32>
    %325 = arith.negf %324 : vector<8x32xf32>
    %326 = math.exp %325 : vector<8x32xf32>
    %cst_93 = arith.constant 1.000000e+00 : f32
    %327 = vector.broadcast %cst_93 : f32 to vector<8x32xf32>
    %328 = arith.addf %327, %326 : vector<8x32xf32>
    %329 = arith.divf %327, %328 : vector<8x32xf32>
    %330 = arith.mulf %321, %261 : vector<8x32xf32>
    %331 = arith.mulf %315, %323 : vector<8x32xf32>
    %332 = arith.addf %330, %331 : vector<8x32xf32>
    %333 = math.tanh %332 : vector<8x32xf32>
    %334 = arith.mulf %329, %333 : vector<8x32xf32>
    %335 = vector.extract_strided_slice %309 {offsets = [0, 0], sizes = [8, 32], strides = [1, 1]} : vector<8x128xf32> to vector<8x32xf32>
    %336 = arith.negf %335 : vector<8x32xf32>
    %337 = math.exp %336 : vector<8x32xf32>
    %cst_94 = arith.constant 1.000000e+00 : f32
    %338 = vector.broadcast %cst_94 : f32 to vector<8x32xf32>
    %339 = arith.addf %338, %337 : vector<8x32xf32>
    %340 = arith.divf %338, %339 : vector<8x32xf32>
    %341 = vector.extract_strided_slice %309 {offsets = [0, 32], sizes = [8, 32], strides = [1, 1]} : vector<8x128xf32> to vector<8x32xf32>
    %342 = arith.negf %341 : vector<8x32xf32>
    %343 = math.exp %342 : vector<8x32xf32>
    %cst_95 = arith.constant 1.000000e+00 : f32
    %344 = vector.broadcast %cst_95 : f32 to vector<8x32xf32>
    %345 = arith.addf %344, %343 : vector<8x32xf32>
    %346 = arith.divf %344, %345 : vector<8x32xf32>
    %347 = vector.extract_strided_slice %309 {offsets = [0, 64], sizes = [8, 32], strides = [1, 1]} : vector<8x128xf32> to vector<8x32xf32>
    %348 = math.tanh %347 : vector<8x32xf32>
    %349 = vector.extract_strided_slice %309 {offsets = [0, 96], sizes = [8, 32], strides = [1, 1]} : vector<8x128xf32> to vector<8x32xf32>
    %350 = arith.negf %349 : vector<8x32xf32>
    %351 = math.exp %350 : vector<8x32xf32>
    %cst_96 = arith.constant 1.000000e+00 : f32
    %352 = vector.broadcast %cst_96 : f32 to vector<8x32xf32>
    %353 = arith.addf %352, %351 : vector<8x32xf32>
    %354 = arith.divf %352, %353 : vector<8x32xf32>
    %355 = arith.mulf %346, %286 : vector<8x32xf32>
    %356 = arith.mulf %340, %348 : vector<8x32xf32>
    %357 = arith.addf %355, %356 : vector<8x32xf32>
    %358 = math.tanh %357 : vector<8x32xf32>
    %359 = arith.mulf %354, %358 : vector<8x32xf32>
    %360 = arith.index_cast %294 : i32 to index
    %c0_97 = arith.constant 0 : index
    %361 = vector.load %arg6[%360, %c0_97] : memref<64x64xf32, #tpu.memory_space<vmem>>, vector<8x32xf32>
    tpu.vector_store %arg6[%360, %c0_97], %334 {strides = array<i32>} : memref<64x64xf32, #tpu.memory_space<vmem>>, vector<8x32xf32>,
    %362 = arith.index_cast %297 : i32 to index
    %c32_98 = arith.constant 32 : index
    %363 = vector.load %arg6[%362, %c32_98] : memref<64x64xf32, #tpu.memory_space<vmem>>, vector<8x32xf32>
    tpu.vector_store %arg6[%362, %c32_98], %359 {strides = array<i32>} : memref<64x64xf32, #tpu.memory_space<vmem>>, vector<8x32xf32>,
    %c5_i32 = arith.constant 5 : i32
    %c8_i32_99 = arith.constant 8 : i32
    %364 = arith.muli %c5_i32, %c8_i32_99 : i32
    %365 = tpu.assume_multiple %364, 8 : i32
    %c7_i32_100 = arith.constant 7 : i32
    %366 = arith.subi %c7_i32_100, %c5_i32 : i32
    %c8_i32_101 = arith.constant 8 : i32
    %367 = arith.muli %366, %c8_i32_101 : i32
    %368 = tpu.assume_multiple %367, 8 : i32
    %369 = arith.index_cast %365 : i32 to index
    %c0_102 = arith.constant 0 : index
    %370 = vector.load %arg9[%369, %c0_102] : memref<64x256xf32, #tpu.memory_space<vmem>>, vector<8x128xf32>
    %371 = arith.truncf %334 : vector<8x32xf32> to vector<8x32xbf16>
    %c0_103 = arith.constant 0 : index
    %c0_104 = arith.constant 0 : index
    %372 = vector.load %arg3[%c0_103, %c0_104] : memref<32x128xbf16, #tpu.memory_space<vmem>>, vector<32x128xbf16>
    %cst_105 = arith.constant dense<0.000000e+00> : vector<8x128xf32>
    %373 = tpu.matmul %371, %372, %cst_105 {dimension_numbers = #tpu.dot_dimension_numbers<[1], [0], [0], [1], [0, 0, 1, 1], [], []>} : vector<8x32xbf16>, vector<32x128xbf16>, vector<8x128xf32> -> vector<8x128xf32>
    %374 = arith.addf %370, %373 : vector<8x128xf32>
    %375 = arith.index_cast %368 : i32 to index
    %c128_106 = arith.constant 128 : index
    %376 = vector.load %arg9[%375, %c128_106] : memref<64x256xf32, #tpu.memory_space<vmem>>, vector<8x128xf32>
    %377 = arith.truncf %359 : vector<8x32xf32> to vector<8x32xbf16>
    %c0_107 = arith.constant 0 : index
    %c0_108 = arith.constant 0 : index
    %378 = vector.load %arg4[%c0_107, %c0_108] : memref<32x128xbf16, #tpu.memory_space<vmem>>, vector<32x128xbf16>
    %cst_109 = arith.constant dense<0.000000e+00> : vector<8x128xf32>
    %379 = tpu.matmul %377, %378, %cst_109 {dimension_numbers = #tpu.dot_dimension_numbers<[1], [0], [0], [1], [0, 0, 1, 1], [], []>} : vector<8x32xbf16>, vector<32x128xbf16>, vector<8x128xf32> -> vector<8x128xf32>
    %380 = arith.addf %376, %379 : vector<8x128xf32>
    %381 = vector.extract_strided_slice %374 {offsets = [0, 0], sizes = [8, 32], strides = [1, 1]} : vector<8x128xf32> to vector<8x32xf32>
    %382 = arith.negf %381 : vector<8x32xf32>
    %383 = math.exp %382 : vector<8x32xf32>
    %cst_110 = arith.constant 1.000000e+00 : f32
    %384 = vector.broadcast %cst_110 : f32 to vector<8x32xf32>
    %385 = arith.addf %384, %383 : vector<8x32xf32>
    %386 = arith.divf %384, %385 : vector<8x32xf32>
    %387 = vector.extract_strided_slice %374 {offsets = [0, 32], sizes = [8, 32], strides = [1, 1]} : vector<8x128xf32> to vector<8x32xf32>
    %388 = arith.negf %387 : vector<8x32xf32>
    %389 = math.exp %388 : vector<8x32xf32>
    %cst_111 = arith.constant 1.000000e+00 : f32
    %390 = vector.broadcast %cst_111 : f32 to vector<8x32xf32>
    %391 = arith.addf %390, %389 : vector<8x32xf32>
    %392 = arith.divf %390, %391 : vector<8x32xf32>
    %393 = vector.extract_strided_slice %374 {offsets = [0, 64], sizes = [8, 32], strides = [1, 1]} : vector<8x128xf32> to vector<8x32xf32>
    %394 = math.tanh %393 : vector<8x32xf32>
    %395 = vector.extract_strided_slice %374 {offsets = [0, 96], sizes = [8, 32], strides = [1, 1]} : vector<8x128xf32> to vector<8x32xf32>
    %396 = arith.negf %395 : vector<8x32xf32>
    %397 = math.exp %396 : vector<8x32xf32>
    %cst_112 = arith.constant 1.000000e+00 : f32
    %398 = vector.broadcast %cst_112 : f32 to vector<8x32xf32>
    %399 = arith.addf %398, %397 : vector<8x32xf32>
    %400 = arith.divf %398, %399 : vector<8x32xf32>
    %401 = arith.mulf %392, %332 : vector<8x32xf32>
    %402 = arith.mulf %386, %394 : vector<8x32xf32>
    %403 = arith.addf %401, %402 : vector<8x32xf32>
    %404 = math.tanh %403 : vector<8x32xf32>
    %405 = arith.mulf %400, %404 : vector<8x32xf32>
    %406 = vector.extract_strided_slice %380 {offsets = [0, 0], sizes = [8, 32], strides = [1, 1]} : vector<8x128xf32> to vector<8x32xf32>
    %407 = arith.negf %406 : vector<8x32xf32>
    %408 = math.exp %407 : vector<8x32xf32>
    %cst_113 = arith.constant 1.000000e+00 : f32
    %409 = vector.broadcast %cst_113 : f32 to vector<8x32xf32>
    %410 = arith.addf %409, %408 : vector<8x32xf32>
    %411 = arith.divf %409, %410 : vector<8x32xf32>
    %412 = vector.extract_strided_slice %380 {offsets = [0, 32], sizes = [8, 32], strides = [1, 1]} : vector<8x128xf32> to vector<8x32xf32>
    %413 = arith.negf %412 : vector<8x32xf32>
    %414 = math.exp %413 : vector<8x32xf32>
    %cst_114 = arith.constant 1.000000e+00 : f32
    %415 = vector.broadcast %cst_114 : f32 to vector<8x32xf32>
    %416 = arith.addf %415, %414 : vector<8x32xf32>
    %417 = arith.divf %415, %416 : vector<8x32xf32>
    %418 = vector.extract_strided_slice %380 {offsets = [0, 64], sizes = [8, 32], strides = [1, 1]} : vector<8x128xf32> to vector<8x32xf32>
    %419 = math.tanh %418 : vector<8x32xf32>
    %420 = vector.extract_strided_slice %380 {offsets = [0, 96], sizes = [8, 32], strides = [1, 1]} : vector<8x128xf32> to vector<8x32xf32>
    %421 = arith.negf %420 : vector<8x32xf32>
    %422 = math.exp %421 : vector<8x32xf32>
    %cst_115 = arith.constant 1.000000e+00 : f32
    %423 = vector.broadcast %cst_115 : f32 to vector<8x32xf32>
    %424 = arith.addf %423, %422 : vector<8x32xf32>
    %425 = arith.divf %423, %424 : vector<8x32xf32>
    %426 = arith.mulf %417, %357 : vector<8x32xf32>
    %427 = arith.mulf %411, %419 : vector<8x32xf32>
    %428 = arith.addf %426, %427 : vector<8x32xf32>
    %429 = math.tanh %428 : vector<8x32xf32>
    %430 = arith.mulf %425, %429 : vector<8x32xf32>
    %431 = arith.index_cast %365 : i32 to index
    %c0_116 = arith.constant 0 : index
    %432 = vector.load %arg6[%431, %c0_116] : memref<64x64xf32, #tpu.memory_space<vmem>>, vector<8x32xf32>
    tpu.vector_store %arg6[%431, %c0_116], %405 {strides = array<i32>} : memref<64x64xf32, #tpu.memory_space<vmem>>, vector<8x32xf32>,
    %433 = arith.index_cast %368 : i32 to index
    %c32_117 = arith.constant 32 : index
    %434 = vector.load %arg6[%433, %c32_117] : memref<64x64xf32, #tpu.memory_space<vmem>>, vector<8x32xf32>
    tpu.vector_store %arg6[%433, %c32_117], %430 {strides = array<i32>} : memref<64x64xf32, #tpu.memory_space<vmem>>, vector<8x32xf32>,
    %c6_i32 = arith.constant 6 : i32
    %c8_i32_118 = arith.constant 8 : i32
    %435 = arith.muli %c6_i32, %c8_i32_118 : i32
    %436 = tpu.assume_multiple %435, 8 : i32
    %c7_i32_119 = arith.constant 7 : i32
    %437 = arith.subi %c7_i32_119, %c6_i32 : i32
    %c8_i32_120 = arith.constant 8 : i32
    %438 = arith.muli %437, %c8_i32_120 : i32
    %439 = tpu.assume_multiple %438, 8 : i32
    %440 = arith.index_cast %436 : i32 to index
    %c0_121 = arith.constant 0 : index
    %441 = vector.load %arg9[%440, %c0_121] : memref<64x256xf32, #tpu.memory_space<vmem>>, vector<8x128xf32>
    %442 = arith.truncf %405 : vector<8x32xf32> to vector<8x32xbf16>
    %c0_122 = arith.constant 0 : index
    %c0_123 = arith.constant 0 : index
    %443 = vector.load %arg3[%c0_122, %c0_123] : memref<32x128xbf16, #tpu.memory_space<vmem>>, vector<32x128xbf16>
    %cst_124 = arith.constant dense<0.000000e+00> : vector<8x128xf32>
    %444 = tpu.matmul %442, %443, %cst_124 {dimension_numbers = #tpu.dot_dimension_numbers<[1], [0], [0], [1], [0, 0, 1, 1], [], []>} : vector<8x32xbf16>, vector<32x128xbf16>, vector<8x128xf32> -> vector<8x128xf32>
    %445 = arith.addf %441, %444 : vector<8x128xf32>
    %446 = arith.index_cast %439 : i32 to index
    %c128_125 = arith.constant 128 : index
    %447 = vector.load %arg9[%446, %c128_125] : memref<64x256xf32, #tpu.memory_space<vmem>>, vector<8x128xf32>
    %448 = arith.truncf %430 : vector<8x32xf32> to vector<8x32xbf16>
    %c0_126 = arith.constant 0 : index
    %c0_127 = arith.constant 0 : index
    %449 = vector.load %arg4[%c0_126, %c0_127] : memref<32x128xbf16, #tpu.memory_space<vmem>>, vector<32x128xbf16>
    %cst_128 = arith.constant dense<0.000000e+00> : vector<8x128xf32>
    %450 = tpu.matmul %448, %449, %cst_128 {dimension_numbers = #tpu.dot_dimension_numbers<[1], [0], [0], [1], [0, 0, 1, 1], [], []>} : vector<8x32xbf16>, vector<32x128xbf16>, vector<8x128xf32> -> vector<8x128xf32>
    %451 = arith.addf %447, %450 : vector<8x128xf32>
    %452 = vector.extract_strided_slice %445 {offsets = [0, 0], sizes = [8, 32], strides = [1, 1]} : vector<8x128xf32> to vector<8x32xf32>
    %453 = arith.negf %452 : vector<8x32xf32>
    %454 = math.exp %453 : vector<8x32xf32>
    %cst_129 = arith.constant 1.000000e+00 : f32
    %455 = vector.broadcast %cst_129 : f32 to vector<8x32xf32>
    %456 = arith.addf %455, %454 : vector<8x32xf32>
    %457 = arith.divf %455, %456 : vector<8x32xf32>
    %458 = vector.extract_strided_slice %445 {offsets = [0, 32], sizes = [8, 32], strides = [1, 1]} : vector<8x128xf32> to vector<8x32xf32>
    %459 = arith.negf %458 : vector<8x32xf32>
    %460 = math.exp %459 : vector<8x32xf32>
    %cst_130 = arith.constant 1.000000e+00 : f32
    %461 = vector.broadcast %cst_130 : f32 to vector<8x32xf32>
    %462 = arith.addf %461, %460 : vector<8x32xf32>
    %463 = arith.divf %461, %462 : vector<8x32xf32>
    %464 = vector.extract_strided_slice %445 {offsets = [0, 64], sizes = [8, 32], strides = [1, 1]} : vector<8x128xf32> to vector<8x32xf32>
    %465 = math.tanh %464 : vector<8x32xf32>
    %466 = vector.extract_strided_slice %445 {offsets = [0, 96], sizes = [8, 32], strides = [1, 1]} : vector<8x128xf32> to vector<8x32xf32>
    %467 = arith.negf %466 : vector<8x32xf32>
    %468 = math.exp %467 : vector<8x32xf32>
    %cst_131 = arith.constant 1.000000e+00 : f32
    %469 = vector.broadcast %cst_131 : f32 to vector<8x32xf32>
    %470 = arith.addf %469, %468 : vector<8x32xf32>
    %471 = arith.divf %469, %470 : vector<8x32xf32>
    %472 = arith.mulf %463, %403 : vector<8x32xf32>
    %473 = arith.mulf %457, %465 : vector<8x32xf32>
    %474 = arith.addf %472, %473 : vector<8x32xf32>
    %475 = math.tanh %474 : vector<8x32xf32>
    %476 = arith.mulf %471, %475 : vector<8x32xf32>
    %477 = vector.extract_strided_slice %451 {offsets = [0, 0], sizes = [8, 32], strides = [1, 1]} : vector<8x128xf32> to vector<8x32xf32>
    %478 = arith.negf %477 : vector<8x32xf32>
    %479 = math.exp %478 : vector<8x32xf32>
    %cst_132 = arith.constant 1.000000e+00 : f32
    %480 = vector.broadcast %cst_132 : f32 to vector<8x32xf32>
    %481 = arith.addf %480, %479 : vector<8x32xf32>
    %482 = arith.divf %480, %481 : vector<8x32xf32>
    %483 = vector.extract_strided_slice %451 {offsets = [0, 32], sizes = [8, 32], strides = [1, 1]} : vector<8x128xf32> to vector<8x32xf32>
    %484 = arith.negf %483 : vector<8x32xf32>
    %485 = math.exp %484 : vector<8x32xf32>
    %cst_133 = arith.constant 1.000000e+00 : f32
    %486 = vector.broadcast %cst_133 : f32 to vector<8x32xf32>
    %487 = arith.addf %486, %485 : vector<8x32xf32>
    %488 = arith.divf %486, %487 : vector<8x32xf32>
    %489 = vector.extract_strided_slice %451 {offsets = [0, 64], sizes = [8, 32], strides = [1, 1]} : vector<8x128xf32> to vector<8x32xf32>
    %490 = math.tanh %489 : vector<8x32xf32>
    %491 = vector.extract_strided_slice %451 {offsets = [0, 96], sizes = [8, 32], strides = [1, 1]} : vector<8x128xf32> to vector<8x32xf32>
    %492 = arith.negf %491 : vector<8x32xf32>
    %493 = math.exp %492 : vector<8x32xf32>
    %cst_134 = arith.constant 1.000000e+00 : f32
    %494 = vector.broadcast %cst_134 : f32 to vector<8x32xf32>
    %495 = arith.addf %494, %493 : vector<8x32xf32>
    %496 = arith.divf %494, %495 : vector<8x32xf32>
    %497 = arith.mulf %488, %428 : vector<8x32xf32>
    %498 = arith.mulf %482, %490 : vector<8x32xf32>
    %499 = arith.addf %497, %498 : vector<8x32xf32>
    %500 = math.tanh %499 : vector<8x32xf32>
    %501 = arith.mulf %496, %500 : vector<8x32xf32>
    %502 = arith.index_cast %436 : i32 to index
    %c0_135 = arith.constant 0 : index
    %503 = vector.load %arg6[%502, %c0_135] : memref<64x64xf32, #tpu.memory_space<vmem>>, vector<8x32xf32>
    tpu.vector_store %arg6[%502, %c0_135], %476 {strides = array<i32>} : memref<64x64xf32, #tpu.memory_space<vmem>>, vector<8x32xf32>,
    %504 = arith.index_cast %439 : i32 to index
    %c32_136 = arith.constant 32 : index
    %505 = vector.load %arg6[%504, %c32_136] : memref<64x64xf32, #tpu.memory_space<vmem>>, vector<8x32xf32>
    tpu.vector_store %arg6[%504, %c32_136], %501 {strides = array<i32>} : memref<64x64xf32, #tpu.memory_space<vmem>>, vector<8x32xf32>,
    %c7_i32_137 = arith.constant 7 : i32
    %c8_i32_138 = arith.constant 8 : i32
    %506 = arith.muli %c7_i32_137, %c8_i32_138 : i32
    %507 = tpu.assume_multiple %506, 8 : i32
    %c7_i32_139 = arith.constant 7 : i32
    %508 = arith.subi %c7_i32_139, %c7_i32_137 : i32
    %c8_i32_140 = arith.constant 8 : i32
    %509 = arith.muli %508, %c8_i32_140 : i32
    %510 = tpu.assume_multiple %509, 8 : i32
    %511 = arith.index_cast %507 : i32 to index
    %c0_141 = arith.constant 0 : index
    %512 = vector.load %arg9[%511, %c0_141] : memref<64x256xf32, #tpu.memory_space<vmem>>, vector<8x128xf32>
    %513 = arith.truncf %476 : vector<8x32xf32> to vector<8x32xbf16>
    %c0_142 = arith.constant 0 : index
    %c0_143 = arith.constant 0 : index
    %514 = vector.load %arg3[%c0_142, %c0_143] : memref<32x128xbf16, #tpu.memory_space<vmem>>, vector<32x128xbf16>
    %cst_144 = arith.constant dense<0.000000e+00> : vector<8x128xf32>
    %515 = tpu.matmul %513, %514, %cst_144 {dimension_numbers = #tpu.dot_dimension_numbers<[1], [0], [0], [1], [0, 0, 1, 1], [], []>} : vector<8x32xbf16>, vector<32x128xbf16>, vector<8x128xf32> -> vector<8x128xf32>
    %516 = arith.addf %512, %515 : vector<8x128xf32>
    %517 = arith.index_cast %510 : i32 to index
    %c128_145 = arith.constant 128 : index
    %518 = vector.load %arg9[%517, %c128_145] : memref<64x256xf32, #tpu.memory_space<vmem>>, vector<8x128xf32>
    %519 = arith.truncf %501 : vector<8x32xf32> to vector<8x32xbf16>
    %c0_146 = arith.constant 0 : index
    %c0_147 = arith.constant 0 : index
    %520 = vector.load %arg4[%c0_146, %c0_147] : memref<32x128xbf16, #tpu.memory_space<vmem>>, vector<32x128xbf16>
    %cst_148 = arith.constant dense<0.000000e+00> : vector<8x128xf32>
    %521 = tpu.matmul %519, %520, %cst_148 {dimension_numbers = #tpu.dot_dimension_numbers<[1], [0], [0], [1], [0, 0, 1, 1], [], []>} : vector<8x32xbf16>, vector<32x128xbf16>, vector<8x128xf32> -> vector<8x128xf32>
    %522 = arith.addf %518, %521 : vector<8x128xf32>
    %523 = vector.extract_strided_slice %516 {offsets = [0, 0], sizes = [8, 32], strides = [1, 1]} : vector<8x128xf32> to vector<8x32xf32>
    %524 = arith.negf %523 : vector<8x32xf32>
    %525 = math.exp %524 : vector<8x32xf32>
    %cst_149 = arith.constant 1.000000e+00 : f32
    %526 = vector.broadcast %cst_149 : f32 to vector<8x32xf32>
    %527 = arith.addf %526, %525 : vector<8x32xf32>
    %528 = arith.divf %526, %527 : vector<8x32xf32>
    %529 = vector.extract_strided_slice %516 {offsets = [0, 32], sizes = [8, 32], strides = [1, 1]} : vector<8x128xf32> to vector<8x32xf32>
    %530 = arith.negf %529 : vector<8x32xf32>
    %531 = math.exp %530 : vector<8x32xf32>
    %cst_150 = arith.constant 1.000000e+00 : f32
    %532 = vector.broadcast %cst_150 : f32 to vector<8x32xf32>
    %533 = arith.addf %532, %531 : vector<8x32xf32>
    %534 = arith.divf %532, %533 : vector<8x32xf32>
    %535 = vector.extract_strided_slice %516 {offsets = [0, 64], sizes = [8, 32], strides = [1, 1]} : vector<8x128xf32> to vector<8x32xf32>
    %536 = math.tanh %535 : vector<8x32xf32>
    %537 = vector.extract_strided_slice %516 {offsets = [0, 96], sizes = [8, 32], strides = [1, 1]} : vector<8x128xf32> to vector<8x32xf32>
    %538 = arith.negf %537 : vector<8x32xf32>
    %539 = math.exp %538 : vector<8x32xf32>
    %cst_151 = arith.constant 1.000000e+00 : f32
    %540 = vector.broadcast %cst_151 : f32 to vector<8x32xf32>
    %541 = arith.addf %540, %539 : vector<8x32xf32>
    %542 = arith.divf %540, %541 : vector<8x32xf32>
    %543 = arith.mulf %534, %474 : vector<8x32xf32>
    %544 = arith.mulf %528, %536 : vector<8x32xf32>
    %545 = arith.addf %543, %544 : vector<8x32xf32>
    %546 = math.tanh %545 : vector<8x32xf32>
    %547 = arith.mulf %542, %546 : vector<8x32xf32>
    %548 = vector.extract_strided_slice %522 {offsets = [0, 0], sizes = [8, 32], strides = [1, 1]} : vector<8x128xf32> to vector<8x32xf32>
    %549 = arith.negf %548 : vector<8x32xf32>
    %550 = math.exp %549 : vector<8x32xf32>
    %cst_152 = arith.constant 1.000000e+00 : f32
    %551 = vector.broadcast %cst_152 : f32 to vector<8x32xf32>
    %552 = arith.addf %551, %550 : vector<8x32xf32>
    %553 = arith.divf %551, %552 : vector<8x32xf32>
    %554 = vector.extract_strided_slice %522 {offsets = [0, 32], sizes = [8, 32], strides = [1, 1]} : vector<8x128xf32> to vector<8x32xf32>
    %555 = arith.negf %554 : vector<8x32xf32>
    %556 = math.exp %555 : vector<8x32xf32>
    %cst_153 = arith.constant 1.000000e+00 : f32
    %557 = vector.broadcast %cst_153 : f32 to vector<8x32xf32>
    %558 = arith.addf %557, %556 : vector<8x32xf32>
    %559 = arith.divf %557, %558 : vector<8x32xf32>
    %560 = vector.extract_strided_slice %522 {offsets = [0, 64], sizes = [8, 32], strides = [1, 1]} : vector<8x128xf32> to vector<8x32xf32>
    %561 = math.tanh %560 : vector<8x32xf32>
    %562 = vector.extract_strided_slice %522 {offsets = [0, 96], sizes = [8, 32], strides = [1, 1]} : vector<8x128xf32> to vector<8x32xf32>
    %563 = arith.negf %562 : vector<8x32xf32>
    %564 = math.exp %563 : vector<8x32xf32>
    %cst_154 = arith.constant 1.000000e+00 : f32
    %565 = vector.broadcast %cst_154 : f32 to vector<8x32xf32>
    %566 = arith.addf %565, %564 : vector<8x32xf32>
    %567 = arith.divf %565, %566 : vector<8x32xf32>
    %568 = arith.mulf %559, %499 : vector<8x32xf32>
    %569 = arith.mulf %553, %561 : vector<8x32xf32>
    %570 = arith.addf %568, %569 : vector<8x32xf32>
    %571 = math.tanh %570 : vector<8x32xf32>
    %572 = arith.mulf %567, %571 : vector<8x32xf32>
    %573 = arith.index_cast %507 : i32 to index
    %c0_155 = arith.constant 0 : index
    %574 = vector.load %arg6[%573, %c0_155] : memref<64x64xf32, #tpu.memory_space<vmem>>, vector<8x32xf32>
    tpu.vector_store %arg6[%573, %c0_155], %547 {strides = array<i32>} : memref<64x64xf32, #tpu.memory_space<vmem>>, vector<8x32xf32>,
    %575 = arith.index_cast %510 : i32 to index
    %c32_156 = arith.constant 32 : index
    %576 = vector.load %arg6[%575, %c32_156] : memref<64x64xf32, #tpu.memory_space<vmem>>, vector<8x32xf32>
    tpu.vector_store %arg6[%575, %c32_156], %572 {strides = array<i32>} : memref<64x64xf32, #tpu.memory_space<vmem>>, vector<8x32xf32>,
    %c8_i32_157 = arith.constant 8 : i32
    %c0_158 = arith.constant 0 : index
    %c0_159 = arith.constant 0 : index
    %c0_160 = arith.constant 0 : index
    %577 = vector.load %arg7[%c0_158, %c0_159, %c0_160] : memref<2x8x32xf32, #tpu.memory_space<vmem>>, vector<1x8x32xf32>
    %578 = vector.shape_cast %577 : vector<1x8x32xf32> to vector<8x32xf32>
    %579 = vector.shape_cast %547 : vector<8x32xf32> to vector<1x8x32xf32>
    tpu.vector_store %arg7[%c0_158, %c0_159, %c0_160], %579 {strides = array<i32>} : memref<2x8x32xf32, #tpu.memory_space<vmem>>, vector<1x8x32xf32>,
    %c1 = arith.constant 1 : index
    %c0_161 = arith.constant 0 : index
    %c0_162 = arith.constant 0 : index
    %580 = vector.load %arg7[%c1, %c0_161, %c0_162] : memref<2x8x32xf32, #tpu.memory_space<vmem>>, vector<1x8x32xf32>
    %581 = vector.shape_cast %580 : vector<1x8x32xf32> to vector<8x32xf32>
    %582 = vector.shape_cast %572 : vector<8x32xf32> to vector<1x8x32xf32>
    tpu.vector_store %arg7[%c1, %c0_161, %c0_162], %582 {strides = array<i32>} : memref<2x8x32xf32, #tpu.memory_space<vmem>>, vector<1x8x32xf32>,
    %c0_163 = arith.constant 0 : index
    %c0_164 = arith.constant 0 : index
    %c0_165 = arith.constant 0 : index
    %583 = vector.load %arg8[%c0_163, %c0_164, %c0_165] : memref<2x8x32xf32, #tpu.memory_space<vmem>>, vector<1x8x32xf32>
    %584 = vector.shape_cast %583 : vector<1x8x32xf32> to vector<8x32xf32>
    %585 = vector.shape_cast %545 : vector<8x32xf32> to vector<1x8x32xf32>
    tpu.vector_store %arg8[%c0_163, %c0_164, %c0_165], %585 {strides = array<i32>} : memref<2x8x32xf32, #tpu.memory_space<vmem>>, vector<1x8x32xf32>,
    %c1_166 = arith.constant 1 : index
    %c0_167 = arith.constant 0 : index
    %c0_168 = arith.constant 0 : index
    %586 = vector.load %arg8[%c1_166, %c0_167, %c0_168] : memref<2x8x32xf32, #tpu.memory_space<vmem>>, vector<1x8x32xf32>
    %587 = vector.shape_cast %586 : vector<1x8x32xf32> to vector<8x32xf32>
    %588 = vector.shape_cast %570 : vector<8x32xf32> to vector<1x8x32xf32>
    tpu.vector_store %arg8[%c1_166, %c0_167, %c0_168], %588 {strides = array<i32>} : memref<2x8x32xf32, #tpu.memory_space<vmem>>, vector<1x8x32xf32>,
    return
  }
  func.func @transform_0(%arg0: i32) -> (i32, i32) {
    %c0_i32 = arith.constant 0 : i32
    %c0_i32_0 = arith.constant 0 : i32
    %c0_i32_1 = arith.constant 0 : i32
    return %c0_i32, %c0_i32_0 : i32, i32
  }
  func.func @transform_1(%arg0: i32) -> (i32, i32) {
    %c0_i32 = arith.constant 0 : i32
    %c0_i32_0 = arith.constant 0 : i32
    %c0_i32_1 = arith.constant 0 : i32
    return %c0_i32, %c0_i32_0 : i32, i32
  }
  func.func @transform_2(%arg0: i32) -> (i32, i32) {
    %c0_i32 = arith.constant 0 : i32
    %c0_i32_0 = arith.constant 0 : i32
    %c0_i32_1 = arith.constant 0 : i32
    return %c0_i32, %c0_i32_0 : i32, i32
  }
  func.func @transform_3(%arg0: i32) -> (i32, i32) {
    %c0_i32 = arith.constant 0 : i32
    %c0_i32_0 = arith.constant 0 : i32
    %c0_i32_1 = arith.constant 0 : i32
    return %c0_i32, %c0_i32_0 : i32, i32
  }
  func.func @transform_4(%arg0: i32) -> (i32, i32) {
    %c0_i32 = arith.constant 0 : i32
    %c0_i32_0 = arith.constant 0 : i32
    %c0_i32_1 = arith.constant 0 : i32
    return %c0_i32, %c0_i32_0 : i32, i32
  }
  func.func @transform_5(%arg0: i32) -> (i32, i32) {
    %c0_i32 = arith.constant 0 : i32
    %c0_i32_0 = arith.constant 0 : i32
    %c0_i32_1 = arith.constant 0 : i32
    return %c0_i32, %c0_i32_0 : i32, i32
  }
  func.func @transform_6(%arg0: i32) -> (i32, i32, i32) {
    %c0_i32 = arith.constant 0 : i32
    %c0_i32_0 = arith.constant 0 : i32
    %c0_i32_1 = arith.constant 0 : i32
    %c0_i32_2 = arith.constant 0 : i32
    return %c0_i32, %c0_i32_0, %c0_i32_1 : i32, i32, i32
  }
  func.func @transform_7(%arg0: i32) -> (i32, i32, i32) {
    %c0_i32 = arith.constant 0 : i32
    %c0_i32_0 = arith.constant 0 : i32
    %c0_i32_1 = arith.constant 0 : i32
    %c0_i32_2 = arith.constant 0 : i32
    return %c0_i32, %c0_i32_0, %c0_i32_1 : i32, i32, i32
  }
}

</mosaic_0001>

<bundles_post_ra>
// kernel: tpu_custom_call.1
= control target key start
LH: loop header
LB: loop body
LE: loop exit
PB: predicated region body
PF: predicated region fallthrough
CT: control target
= control target key end

     0   :  { %13 = vsyncpa [#allocation4], 0  ;;  %v2243_v1 = vmov 0.0   ;;  %v2244_v3 = vmov 0   ;;  %vm2245_vm0 = vmmov 0   ;;  %vm62_vm1 = vcmask 130048   ;;  %s2783_s0 = inlined_call_operand.vmem [shape: f32[64,16], index: 0, kind: input, shape index: {}]   ;;  %s2784_s1 = inlined_call_operand.vmem [shape: bf16[16,256], index: 1, kind: input, shape index: {}]   ;;  %s2785_s2 = inlined_call_operand.vmem [shape: bf16[32,128], index: 2, kind: input, shape index: {}]   ;;  %s2786_s3 = inlined_call_operand.vmem [shape: bf16[32,128], index: 3, kind: input, shape index: {}]   ;;  %s2787_s4 = inlined_call_operand.vmem [shape: f32[1,256], index: 4, kind: input, shape index: {}]   ;;  %s2788_s5 = inlined_call_operand.hbm [shape: f32[64,64], index: 5, kind: output, shape index: {0}]   ;;  %s2789_s6 = inlined_call_operand.hbm [shape: f32[2,8,32], index: 6, kind: output, shape index: {1}]   ;;  %s2790_s7 = inlined_call_operand.hbm [shape: f32[2,8,32], index: 7, kind: output, shape index: {2}]  }
   0x1   :  { %v2016_v0 = vld [vmem:[%s2784_s1 + $0x4] ss:$8 sps:$4 sm:$0xff]   ;;  %1877 = vmatprep.subr.bf16.mxu1 %v2243_v1  ;;  %107 = vmatprep.mubr.bf16.mxu0 %v2244_v3  ;;  %v2019_v4 = vld [vmem:[%s2784_s1] ss:$8 sps:$4 sm:$0xff]   ;;  %v28_v9 = vld [vmem:[%s2783_s0 + $0x10] sm:$0xff] }
   0x2   :  { %v2018_v2 = vld [vmem:[%s2785_s2 + $0x8] sm:$0xff]   ;;  %89 = vmatprep.subr.bf16.mxu0 %v2016_v0  ;;  %v26_v5 = vld [vmem:[%s2783_s0] sm:$0xff]  ;;  %1881 = vmatprep.mubr.msk.bf16.mxu1 %vm2245_vm0, %v2243_v1  ;;  %v29_v11 = vld [vmem:[%s2783_s0 + $0x18] sm:$0xff] }
   0x3   :  { %v27_v6 = vld [vmem:[%s2783_s0 + $0x8] sm:$0xff]  ;;  %1878 = vmatpush3.bf16.msra.mxu1 %v2018_v2  ;;  %v2020_v8 = vld [vmem:[%s2785_s2] sm:$0xff]   ;;  %90 = vmatpush1.bf16.msra.mxu0 %v2019_v4  ;;  %v35_v13 = vpack.c.bf16 %v29_v11, %v28_v9  ;;  %v32_v17 = vld [vmem:[%s2783_s0 + $0x30] sm:$0xff] }
   0x4   :  { %v34_v7 = vpack.c.bf16 %v27_v6, %v26_v5  ;;  %1879 = vmatprep.subr.bf16.mxu1 %v2243_v1  ;;  %1909 = vmatprep.subr.bf16.mxu0 %v2243_v1  ;;  %v2021_v10 = vld [vmem:[%s2786_s3 + $0x8] sm:$0xff]   ;;  %v2022_v12 = vld [vmem:[%s2786_s3] sm:$0xff]   ;;  %v33_v18 = vld [vmem:[%s2783_s0 + $0x38] sm:$0xff] }
   0x5   :  { %v30_v14 = vld [vmem:[%s2783_s0 + $0x20] sm:$0xff]  ;;  %v31_v15 = vld [vmem:[%s2783_s0 + $0x28] sm:$0xff]  ;;  %v37_v19 = vpack.c.bf16 %v33_v18, %v32_v17 }
   0x6   :  { %1763 = vmatmul.mubr.msk.bf16.vlgmr.msra.gmra.mxu0 %vm62_vm1, %v34_v7  ;;  %v36_v16 = vpack.c.bf16 %v31_v15, %v30_v14 }
   0x7   :  { %1880 = vmatpush3.bf16.msra.mxu1 %v2020_v8  ;;  %117 = vmatprep.mubr.bf16.mxu0 %v2244_v3 }
   0x8   :  { %1885 = vmatprep.subr.bf16.mxu1 %v2243_v1 }
   0xa   :  { %1882 = vmatmul.mubr.bf16.vlgmr.msra.gmra.mxu1 %v2244_v3 }
   0xb   :  { %1886 = vmatpush3.bf16.msra.mxu1 %v2021_v10  ;;  %1889 = vmatprep.mubr.msk.bf16.mxu1 %vm2245_vm0, %v2243_v1 }
   0xc   :  { %1887 = vmatprep.subr.bf16.mxu1 %v2243_v1 }
   0xe   :  { %1764 = vmatmul.mubr.msk.bf16.gmra.mxu0 %vm62_vm1, %v35_v13 }
   0xf   :  { %1888 = vmatpush3.bf16.msra.mxu1 %v2022_v12  ;;  %127 = vmatprep.mubr.bf16.mxu0 %v2244_v3 }
  0x10   :  { %1893 = vmatprep.subr.bf16.mxu1 %v2243_v1 }
  0x12   :  { %1890 = vmatmul.mubr.bf16.vlgmr.msra.gmra.mxu1 %v2244_v3 }
  0x13   :  { %1897 = vmatprep.mubr.msk.bf16.mxu1 %vm2245_vm0, %v2243_v1 }
  0x16   :  { %1765 = vmatmul.mubr.msk.bf16.gmra.mxu0 %vm62_vm1, %v36_v16 }
  0x17   :  { %137 = vmatprep.mubr.bf16.mxu0 %v2244_v3 }
  0x18   :  { %14 = vsyncpa [#allocation6], 0  ;;  %v42_v20 = vlaneseq  ;;  %v40_v23 = vld [vmem:[%s2787_s4] sm:$0x3]  ;;  %s2246_s0 = smov 64   ;;  %s2247_s4 = smov 32  }
  0x19   :  { %vm184_vm2 = vcmask 261120   ;;  %vm348_vm3 = vcmask 523520   ;;  %s2251_s15 = smov [#allocation7]  }
  0x1a   :  { %v43_v21 = vshrl.u32 %v42_v20, 7  ;;  %s1736_s16 = sshll.u32 %s2251_s15, 4  ;;  %s2765_s16 = int_to_ptr.vmem [resolvable:$true] %s1736_s16 }
  0x1c   :  { %v44_v22 = vsub.s32 0, %v43_v21  ;;  %v48_v24 = vsub.s32 1, %v43_v21 }
  0x1e   :  { %1766 = vmatmul.mubr.msk.bf16.gmra.mxu0 %vm62_vm1, %v37_v19  ;;  %v45_v25 = vrot.slane %v40_v23, %v44_v22  ;;  %v49_v26 = vrot.slane %v40_v23, %v48_v24 }
  0x1f   :  { %1913 = vmatprep.mubr.msk.bf16.mxu0 %vm2245_vm0, %v2243_v1 }
  0xc6   :  { %v109_v27 = vpop.f32.mrf.mxu0 }
  0xc7   :  { %v110_v28 = vadd.f32 %v109_v27, %v45_v25  ;;  %v2023_v27 = vld [vmem:[%s2785_s2 + $0x8] sm:$0xff]  }
  0xc8   :  { %v111_v29 = vpop.f32.mrf.mxu0  ;;  %1894 = vmatpush3.bf16.msra.mxu1 %v2023_v27 }
  0xc9   :  { %v2357_v30 = vadd.f32 %v111_v29, %v49_v26  ;;  %1895 = vmatprep.subr.bf16.mxu1 %v2243_v1 }
  0xca   :  { %v222_v31 = vpop.f32.mrf.mxu1  ;;  %v113_v33 = vpop.f32.mrf.mxu0 }
  0xcb   :  { %v228_v32 = vadd.f32 %v222_v31, %v110_v28  ;;  %v2359_v34 = vadd.f32 %v113_v33, %v45_v25  ;;  %v2024_v28 = vld [vmem:[%s2785_s2] sm:$0xff]  }
  0xcc   :  { %v1883_v35 = vpop.f32.mrf.mxu1  ;;  %v115_v36 = vpop.f32.mrf.mxu0  ;;  %1896 = vmatpush3.bf16.msra.mxu1 %v2024_v28 }
  0xcd   :  { %2051 = vtanh.f32 %v228_v32  ;;  %v2361_v37 = vadd.f32 %v115_v36, %v49_v26  ;;  %v1771_v8 = vmul.f32 -1.442695, %v228_v32  ;;  %1901 = vmatprep.subr.bf16.mxu1 %v2243_v1 }
  0xce   :  { %v225_v38 = vpop.f32.mrf.mxu1  ;;  %v119_v39 = vpop.f32.mrf.mxu0 }
  0xcf   :  { %v2363_v40 = vadd.f32 %v119_v39, %v45_v25  ;;  %v2025_v39 = vld [vmem:[%s2786_s3 + $0x8] sm:$0xff]  }
  0xd0   :  { %v1884_v41 = vpop.f32.mrf.mxu1  ;;  %v121_v42 = vpop.f32.mrf.mxu0 }
  0xd1   :  { %v2365_v43 = vadd.f32 %v121_v42, %v49_v26  ;;  %v2026_v42 = vld [vmem:[%s2786_s3] sm:$0xff]  }
  0xd2   :  { %v283_v44 = vpop.f32.mrf.mxu1  ;;  %v123_v45 = vpop.f32.mrf.mxu0 }
  0xd3   :  { %v2367_v46 = vadd.f32 %v123_v45, %v45_v25 }
  0xd4   :  { %v1891_v47 = vpop.f32.mrf.mxu1  ;;  %v125_v48 = vpop.f32.mrf.mxu0 }
  0xd5   :  { %v2369_v49 = vadd.f32 %v125_v48, %v49_v26 }
  0xd6   :  { %v286_v50 = vpop.f32.mrf.mxu1  ;;  %v129_v51 = vpop.f32.mrf.mxu0 }
  0xd7   :  { %v2371_v52 = vadd.f32 %v129_v51, %v45_v25 }
  0xd8   :  { %v1892_v53 = vpop.f32.mrf.mxu1  ;;  %v131_v54 = vpop.f32.mrf.mxu0 }
  0xd9   :  { %v2373_v56 = vadd.f32 %v131_v54, %v49_v26 }
  0xda   :  { %v2052_v55 = vpop.eup %2051  ;;  %v133_v57 = vpop.f32.mrf.mxu0 }
  0xdb   :  { %299 = vrot.lane.b32.xlu0 %v2052_v55, %s2246_s0  ;;  %v2376_v58 = vadd.f32 %v133_v57, %v45_v25 }
  0xdc   :  { %v135_v59 = vpop.f32.mrf.mxu0 }
  0xdd   :  { %v2378_v60 = vadd.f32 %v135_v59, %v49_v26 }
  0xde   :  { %v139_v61 = vpop.f32.mrf.mxu0 }
  0xdf   :  { %v2380_v62 = vadd.f32 %v139_v61, %v45_v25 }
  0xe0   :  { %v141_v63 = vpop.f32.mrf.mxu0 }
  0xe1   :  { %v2382_v0 = vadd.f32 %v141_v63, %v49_v26 }
  0xe2   :  { %v143_v2 = vpop.f32.mrf.mxu0 }
  0xe3   :  { %v2384_v3 = vadd.f32 %v143_v2, %v45_v25 }
  0xe4   :  { %v145_v4 = vpop.f32.mrf.mxu0 }
  0xe5   :  { %v146_v5 = vadd.f32 %v145_v4, %v49_v26 }
  0xe7   :  { %v289_v6 = vadd.f32 %v283_v44, %v146_v5 }
  0xe9   :  { %2053 = vtanh.f32 %v289_v6  ;;  %v1772_v11 = vmul.f32 -1.442695, %v289_v6 }
  0xea   :  { %2055 = vpow2.f32 %v1771_v8 }
  0xf6   :  { %v2054_v7 = vpop.eup %2053 }
  0xf7   :  { %323 = vrot.lane.b32.xlu0 %v2054_v7, %s2246_s0  ;;  %v2056_v9 = vpop.eup %2055 }
  0xf8   :  { %v293_v10 = vadd.f32 1.0, %v2056_v9 }
  0xfa   :  { %2057 = vrcp.f32 %v293_v10 }
  0xfb   :  { %2059 = vpow2.f32 %v1772_v11 }
 0x107   :  { %v2058_v12 = vpop.eup %2057 }
 0x108   :  { %v2060_v15 = vpop.eup %2059  ;;  %v297_v20 = vmul.f32 0.0, %v2058_v12 }
 0x109   :  { %v317_v16 = vadd.f32 1.0, %v2060_v15 }
 0x10b   :  { %2061 = vrcp.f32 %v317_v16 }
 0x118   :  { %v2062_v17 = vpop.eup %2061 }
 0x119   :  { %v321_v24 = vmul.f32 0.0, %v2062_v17 }
 0x14d   :  { %v300_v13 = vpop.permute.xlu0 %299 }
 0x14e   :  { %v302_v14 = vmul.f32 %v2058_v12, %v300_v13 }
 0x150   :  { %304 = vrot.lane.b32.xlu1 %v302_v14, %s2247_s4 }
 0x169   :  { %v324_v18 = vpop.permute.xlu0 %323 }
 0x16a   :  { %v326_v19 = vmul.f32 %v2062_v17, %v324_v18 }
 0x16c   :  { %328 = vrot.lane.b32.xlu1 %v326_v19, %s2247_s4 }
 0x1c2   :  { %v305_v21 = vpop.permute.xlu1 %304 }
 0x1c3   :  { %v2389_v22 = vadd.f32 %v305_v21, %v297_v20  ;;  %v2027_v20 = vld [vmem:[%s2785_s2 + $0x8] sm:$0xff]   ;;  %v2028_v21 = vld [vmem:[%s2785_s2] sm:$0xff]  }
 0x1c4   :  { %1910 = vmatpush3.bf16.msra.mxu0 %v2027_v20 }
 0x1c5   :  { %2063 = vtanh.f32 %v2389_v22  ;;  %1911 = vmatprep.subr.bf16.mxu0 %v2243_v1 }
 0x1c8   :  { %1912 = vmatpush3.bf16.msra.mxu0 %v2028_v21 }
 0x1c9   :  { %1925 = vmatprep.subr.bf16.mxu0 %v2243_v1 }
 0x1d2   :  { %v2064_v23 = vpop.eup %2063 }
 0x1d3   :  { %310 = vrot.lane.b32.xlu0 %v2064_v23, %s2246_s0  ;;  %v2029_v23 = vld [vmem:[%s2786_s3 + $0x8] sm:$0xff]  }
 0x1de   :  { %v329_v25 = vpop.permute.xlu1 %328 }
 0x1df   :  { %v2393_v26 = vadd.f32 %v329_v25, %v321_v24  ;;  %v2030_v24 = vld [vmem:[%s2786_s3] sm:$0xff]  }
 0x1e1   :  { %2065 = vtanh.f32 %v2393_v26 }
 0x1ee   :  { %v2066_v29 = vpop.eup %2065 }
 0x1ef   :  { %334 = vrot.lane.b32.xlu1 %v2066_v29, %s2246_s0 }
 0x245   :  { %v311_v31 = vpop.permute.xlu0 %310 }
 0x246   :  { %v2405_v32 = vmul.f32 %v2058_v12, %v311_v31 }
 0x248   :  { %v354_v33 = vpack.c.bf16 %v2405_v32, %v2405_v32 }
 0x24a   :  { %360 = vrot.lane.b32.xlu0 %v354_v33, %s2247_s4 }
 0x261   :  { %v335_v35 = vpop.permute.xlu1 %334 }
 0x262   :  { %v2410_v36 = vmul.f32 %v2062_v17, %v335_v35 }
 0x264   :  { %v422_v38 = vpack.c.bf16 %v2410_v36, %v2410_v36 }
 0x266   :  { %428 = vrot.lane.b32.xlu1 %v422_v38, %s2247_s4 }
 0x2bc   :  { %v361_v41 = vpop.permute.xlu0 %360 }
 0x2bd   :  { %1898 = vmatmul.mubr.msk.bf16.vlgmr.msra.gmra.mxu1 %vm184_vm2, %v361_v41 }
 0x2be   :  { %1902 = vmatpush3.bf16.msra.mxu1 %v2025_v39  ;;  %1905 = vmatprep.mubr.msk.bf16.mxu1 %vm2245_vm0, %v2243_v1 }
 0x2bf   :  { %1903 = vmatprep.subr.bf16.mxu1 %v2243_v1 }
 0x2c2   :  { %1904 = vmatpush3.bf16.msra.mxu1 %v2026_v42 }
 0x2c3   :  { %1917 = vmatprep.subr.bf16.mxu1 %v2243_v1 }
 0x2d8   :  { %v429_v44 = vpop.permute.xlu1 %428 }
 0x2d9   :  { %1906 = vmatmul.mubr.msk.bf16.vlgmr.msra.gmra.mxu1 %vm184_vm2, %v429_v44 }
 0x2da   :  { %1921 = vmatprep.mubr.msk.bf16.mxu1 %vm2245_vm0, %v2243_v1  ;;  %1918 = vmatpush3.bf16.msra.mxu1 %v2029_v23 }
 0x2db   :  { %1919 = vmatprep.subr.bf16.mxu1 %v2243_v1 }
 0x2de   :  { %1920 = vmatpush3.bf16.msra.mxu1 %v2030_v24 }
 0x2df   :  { %1933 = vmatprep.subr.bf16.mxu1 %v2243_v1 }
 0x37d   :  { %v411_v45 = vpop.f32.mrf.mxu1 }
 0x37e   :  { %v417_v47 = vadd.f32 %v411_v45, %v2359_v34 }
 0x37f   :  { %v1899_v48 = vpop.f32.mrf.mxu1 }
 0x380   :  { %2067 = vtanh.f32 %v417_v47  ;;  %v1779_v2 = vmul.f32 -1.442695, %v417_v47 }
 0x381   :  { %v414_v50 = vpop.f32.mrf.mxu1 }
 0x383   :  { %v1900_v51 = vpop.f32.mrf.mxu1 }
 0x38d   :  { %v2068_v53 = vpop.eup %2067 }
 0x38e   :  { %495 = vrot.lane.b32.xlu0 %v2068_v53, %s2246_s0 }
 0x399   :  { %v479_v54 = vpop.f32.mrf.mxu1 }
 0x39a   :  { %v485_v55 = vadd.f32 %v479_v54, %v2382_v0 }
 0x39b   :  { %v1907_v57 = vpop.f32.mrf.mxu1 }
 0x39c   :  { %2069 = vtanh.f32 %v485_v55  ;;  %v1780_v5 = vmul.f32 -1.442695, %v485_v55 }
 0x39d   :  { %v482_v59 = vpop.f32.mrf.mxu1  ;;  %2071 = vpow2.f32 %v1779_v2 }
 0x39f   :  { %v1908_v61 = vpop.f32.mrf.mxu1 }
 0x3a9   :  { %v2070_v63 = vpop.eup %2069 }
 0x3aa   :  { %519 = vrot.lane.b32.xlu1 %v2070_v63, %s2246_s0  ;;  %v2072_v34 = vpop.eup %2071 }
 0x3ab   :  { %v489_v4 = vadd.f32 1.0, %v2072_v34 }
 0x3ad   :  { %2073 = vrcp.f32 %v489_v4 }
 0x3ae   :  { %2075 = vpow2.f32 %v1780_v5 }
 0x3ba   :  { %v2074_v6 = vpop.eup %2073 }
 0x3bb   :  { %v2076_v0 = vpop.eup %2075  ;;  %v493_v13 = vmul.f32 %v2074_v6, %v2389_v22 }
 0x3bc   :  { %v513_v9 = vadd.f32 1.0, %v2076_v0 }
 0x3be   :  { %2077 = vrcp.f32 %v513_v9 }
 0x3cb   :  { %v2078_v10 = vpop.eup %2077 }
 0x3cc   :  { %v517_v17 = vmul.f32 %v2078_v10, %v2393_v26 }
 0x400   :  { %v496_v7 = vpop.permute.xlu0 %495 }
 0x401   :  { %v498_v8 = vmul.f32 %v2074_v6, %v496_v7 }
 0x403   :  { %500 = vrot.lane.b32.xlu0 %v498_v8, %s2247_s4 }
 0x41c   :  { %v520_v11 = vpop.permute.xlu1 %519 }
 0x41d   :  { %v522_v12 = vmul.f32 %v2078_v10, %v520_v11 }
 0x41f   :  { %524 = vrot.lane.b32.xlu1 %v522_v12, %s2247_s4 }
 0x475   :  { %v501_v14 = vpop.permute.xlu0 %500 }
 0x476   :  { %v2436_v15 = vadd.f32 %v501_v14, %v493_v13  ;;  %v2031_v13 = vld [vmem:[%s2785_s2 + $0x8] sm:$0xff]   ;;  %v2032_v14 = vld [vmem:[%s2785_s2] sm:$0xff]  }
 0x478   :  { %2079 = vtanh.f32 %v2436_v15 }
 0x485   :  { %v2080_v16 = vpop.eup %2079 }
 0x486   :  { %506 = vrot.lane.b32.xlu0 %v2080_v16, %s2246_s0  ;;  %v2033_v16 = vld [vmem:[%s2786_s3 + $0x8] sm:$0xff]  }
 0x491   :  { %v525_v18 = vpop.permute.xlu1 %524 }
 0x492   :  { %v2441_v19 = vadd.f32 %v525_v18, %v517_v17  ;;  %v2034_v17 = vld [vmem:[%s2786_s3] sm:$0xff]  }
 0x494   :  { %2081 = vtanh.f32 %v2441_v19 }
 0x4a1   :  { %v2082_v22 = vpop.eup %2081 }
 0x4a2   :  { %530 = vrot.lane.b32.xlu1 %v2082_v22, %s2246_s0 }
 0x4f8   :  { %v507_v25 = vpop.permute.xlu0 %506 }
 0x4f9   :  { %v2461_v26 = vmul.f32 %v2074_v6, %v507_v25 }
 0x4fb   :  { %v550_v27 = vpack.c.bf16 %v2461_v26, %v2461_v26 }
 0x4fd   :  { %556 = vrot.lane.b32.xlu0 %v550_v27, %s2247_s4 }
 0x514   :  { %v531_v28 = vpop.permute.xlu1 %530 }
 0x515   :  { %v2466_v29 = vmul.f32 %v2078_v10, %v531_v28 }
 0x517   :  { %v618_v31 = vpack.c.bf16 %v2466_v29, %v2466_v29 }
 0x519   :  { %624 = vrot.lane.b32.xlu1 %v618_v31, %s2247_s4 }
 0x56f   :  { %v557_v33 = vpop.permute.xlu0 %556 }
 0x570   :  { %1914 = vmatmul.mubr.msk.bf16.vlgmr.msra.gmra.mxu0 %vm184_vm2, %v557_v33 }
 0x571   :  { %1929 = vmatprep.mubr.msk.bf16.mxu0 %vm2245_vm0, %v2243_v1  ;;  %1926 = vmatpush3.bf16.msra.mxu0 %v2031_v13 }
 0x572   :  { %1927 = vmatprep.subr.bf16.mxu0 %v2243_v1 }
 0x575   :  { %1928 = vmatpush3.bf16.msra.mxu0 %v2032_v14 }
 0x576   :  { %1941 = vmatprep.subr.bf16.mxu0 %v2243_v1 }
 0x58b   :  { %v625_v35 = vpop.permute.xlu1 %624 }
 0x58c   :  { %1922 = vmatmul.mubr.msk.bf16.vlgmr.msra.gmra.mxu1 %vm184_vm2, %v625_v35 }
 0x58d   :  { %1937 = vmatprep.mubr.msk.bf16.mxu1 %vm2245_vm0, %v2243_v1  ;;  %1934 = vmatpush3.bf16.msra.mxu1 %v2033_v16 }
 0x58e   :  { %1935 = vmatprep.subr.bf16.mxu1 %v2243_v1 }
 0x591   :  { %1936 = vmatpush3.bf16.msra.mxu1 %v2034_v17 }
 0x592   :  { %1949 = vmatprep.subr.bf16.mxu1 %v2243_v1 }
 0x630   :  { %v607_v38 = vpop.f32.mrf.mxu0 }
 0x631   :  { %v613_v39 = vadd.f32 %v607_v38, %v2363_v40 }
 0x632   :  { %v1915_v41 = vpop.f32.mrf.mxu0 }
 0x633   :  { %2083 = vtanh.f32 %v613_v39  ;;  %v1787_v55 = vmul.f32 -1.442695, %v613_v39 }
 0x634   :  { %v610_v42 = vpop.f32.mrf.mxu0 }
 0x636   :  { %v1916_v44 = vpop.f32.mrf.mxu0 }
 0x640   :  { %v2084_v45 = vpop.eup %2083 }
 0x641   :  { %691 = vrot.lane.b32.xlu0 %v2084_v45, %s2246_s0 }
 0x64c   :  { %v675_v47 = vpop.f32.mrf.mxu1 }
 0x64d   :  { %v681_v48 = vadd.f32 %v675_v47, %v2378_v60 }
 0x64e   :  { %v1923_v50 = vpop.f32.mrf.mxu1 }
 0x64f   :  { %2085 = vtanh.f32 %v681_v48  ;;  %v1788_v59 = vmul.f32 -1.442695, %v681_v48 }
 0x650   :  { %v678_v51 = vpop.f32.mrf.mxu1  ;;  %2087 = vpow2.f32 %v1787_v55 }
 0x652   :  { %v1924_v53 = vpop.f32.mrf.mxu1 }
 0x65c   :  { %v2086_v54 = vpop.eup %2085 }
 0x65d   :  { %715 = vrot.lane.b32.xlu1 %v2086_v54, %s2246_s0  ;;  %v2088_v40 = vpop.eup %2087 }
 0x65e   :  { %v685_v57 = vadd.f32 1.0, %v2088_v40 }
 0x660   :  { %2089 = vrcp.f32 %v685_v57 }
 0x661   :  { %2091 = vpow2.f32 %v1788_v59 }
 0x66d   :  { %v2090_v61 = vpop.eup %2089 }
 0x66e   :  { %v2092_v60 = vpop.eup %2091  ;;  %v689_v7 = vmul.f32 %v2090_v61, %v2436_v15 }
 0x66f   :  { %v709_v34 = vadd.f32 1.0, %v2092_v60 }
 0x671   :  { %2093 = vrcp.f32 %v709_v34 }
 0x67e   :  { %v2094_v4 = vpop.eup %2093 }
 0x67f   :  { %v713_v10 = vmul.f32 %v2094_v4, %v2441_v19 }
 0x6b3   :  { %v692_v63 = vpop.permute.xlu0 %691 }
 0x6b4   :  { %v694_v2 = vmul.f32 %v2090_v61, %v692_v63 }
 0x6b6   :  { %696 = vrot.lane.b32.xlu0 %v694_v2, %s2247_s4 }
 0x6cf   :  { %v716_v5 = vpop.permute.xlu1 %715 }
 0x6d0   :  { %v718_v6 = vmul.f32 %v2094_v4, %v716_v5 }
 0x6d2   :  { %720 = vrot.lane.b32.xlu1 %v718_v6, %s2247_s4 }
 0x728   :  { %v697_v8 = vpop.permute.xlu0 %696 }
 0x729   :  { %v2484_v0 = vadd.f32 %v697_v8, %v689_v7  ;;  %v2035_v7 = vld [vmem:[%s2785_s2 + $0x8] sm:$0xff]   ;;  %v2036_v8 = vld [vmem:[%s2785_s2] sm:$0xff]  }
 0x72b   :  { %2095 = vtanh.f32 %v2484_v0 }
 0x738   :  { %v2096_v9 = vpop.eup %2095 }
 0x739   :  { %702 = vrot.lane.b32.xlu0 %v2096_v9, %s2246_s0  ;;  %v2037_v9 = vld [vmem:[%s2786_s3 + $0x8] sm:$0xff]  }
 0x744   :  { %v721_v11 = vpop.permute.xlu1 %720 }
 0x745   :  { %v2489_v12 = vadd.f32 %v721_v11, %v713_v10  ;;  %v2038_v10 = vld [vmem:[%s2786_s3] sm:$0xff]  }
 0x747   :  { %2097 = vtanh.f32 %v2489_v12 }
 0x754   :  { %v2098_v15 = vpop.eup %2097 }
 0x755   :  { %726 = vrot.lane.b32.xlu1 %v2098_v15, %s2246_s0 }
 0x7ab   :  { %v703_v18 = vpop.permute.xlu0 %702 }
 0x7ac   :  { %v2509_v19 = vmul.f32 %v2090_v61, %v703_v18 }
 0x7ae   :  { %v746_v20 = vpack.c.bf16 %v2509_v19, %v2509_v19 }
 0x7b0   :  { %752 = vrot.lane.b32.xlu0 %v746_v20, %s2247_s4 }
 0x7c7   :  { %v727_v21 = vpop.permute.xlu1 %726 }
 0x7c8   :  { %v2514_v22 = vmul.f32 %v2094_v4, %v727_v21 }
 0x7ca   :  { %v814_v23 = vpack.c.bf16 %v2514_v22, %v2514_v22 }
 0x7cc   :  { %820 = vrot.lane.b32.xlu1 %v814_v23, %s2247_s4 }
 0x822   :  { %v753_v24 = vpop.permute.xlu0 %752 }
 0x823   :  { %1930 = vmatmul.mubr.msk.bf16.vlgmr.msra.gmra.mxu0 %vm184_vm2, %v753_v24 }
 0x824   :  { %1945 = vmatprep.mubr.msk.bf16.mxu0 %vm2245_vm0, %v2243_v1  ;;  %1942 = vmatpush3.bf16.msra.mxu0 %v2035_v7 }
 0x825   :  { %1943 = vmatprep.subr.bf16.mxu0 %v2243_v1 }
 0x828   :  { %1944 = vmatpush3.bf16.msra.mxu0 %v2036_v8 }
 0x829   :  { %1957 = vmatprep.subr.bf16.mxu0 %v2243_v1 }
 0x83e   :  { %v821_v25 = vpop.permute.xlu1 %820 }
 0x83f   :  { %1938 = vmatmul.mubr.msk.bf16.vlgmr.msra.gmra.mxu1 %vm184_vm2, %v821_v25 }
 0x840   :  { %1953 = vmatprep.mubr.msk.bf16.mxu1 %vm2245_vm0, %v2243_v1  ;;  %1950 = vmatpush3.bf16.msra.mxu1 %v2037_v9 }
 0x841   :  { %1951 = vmatprep.subr.bf16.mxu1 %v2243_v1 }
 0x844   :  { %1952 = vmatpush3.bf16.msra.mxu1 %v2038_v10 }
 0x845   :  { %1965 = vmatprep.subr.bf16.mxu1 %v2243_v1 }
 0x8e3   :  { %v803_v27 = vpop.f32.mrf.mxu0 }
 0x8e4   :  { %v809_v28 = vadd.f32 %v803_v27, %v2367_v46 }
 0x8e5   :  { %v1931_v31 = vpop.f32.mrf.mxu0 }
 0x8e6   :  { %2099 = vtanh.f32 %v809_v28  ;;  %v1795_v48 = vmul.f32 -1.442695, %v809_v28 }
 0x8e7   :  { %v806_v33 = vpop.f32.mrf.mxu0 }
 0x8e9   :  { %v1932_v35 = vpop.f32.mrf.mxu0 }
 0x8f3   :  { %v2100_v38 = vpop.eup %2099 }
 0x8f4   :  { %887 = vrot.lane.b32.xlu0 %v2100_v38, %s2246_s0 }
 0x8ff   :  { %v871_v39 = vpop.f32.mrf.mxu1 }
 0x900   :  { %v877_v41 = vadd.f32 %v871_v39, %v2373_v56 }
 0x901   :  { %v1939_v42 = vpop.f32.mrf.mxu1 }
 0x902   :  { %2101 = vtanh.f32 %v877_v41  ;;  %v1796_v51 = vmul.f32 -1.442695, %v877_v41 }
 0x903   :  { %v874_v44 = vpop.f32.mrf.mxu1  ;;  %2103 = vpow2.f32 %v1795_v48 }
 0x905   :  { %v1940_v45 = vpop.f32.mrf.mxu1 }
 0x90f   :  { %v2102_v47 = vpop.eup %2101 }
 0x910   :  { %911 = vrot.lane.b32.xlu1 %v2102_v47, %s2246_s0  ;;  %v2104_v46 = vpop.eup %2103 }
 0x911   :  { %v881_v50 = vadd.f32 1.0, %v2104_v46 }
 0x913   :  { %2105 = vrcp.f32 %v881_v50 }
 0x914   :  { %2107 = vpow2.f32 %v1796_v51 }
 0x920   :  { %v2106_v53 = vpop.eup %2105 }
 0x921   :  { %v2108_v56 = vpop.eup %2107  ;;  %v885_v63 = vmul.f32 %v2106_v53, %v2484_v0 }
 0x922   :  { %v905_v40 = vadd.f32 1.0, %v2108_v56 }
 0x924   :  { %2109 = vrcp.f32 %v905_v40 }
 0x931   :  { %v2110_v57 = vpop.eup %2109 }
 0x932   :  { %v909_v4 = vmul.f32 %v2110_v57, %v2489_v12 }
 0x966   :  { %v888_v54 = vpop.permute.xlu0 %887 }
 0x967   :  { %v890_v55 = vmul.f32 %v2106_v53, %v888_v54 }
 0x969   :  { %892 = vrot.lane.b32.xlu0 %v890_v55, %s2247_s4 }
 0x982   :  { %v912_v59 = vpop.permute.xlu1 %911 }
 0x983   :  { %v914_v61 = vmul.f32 %v2110_v57, %v912_v59 }
 0x985   :  { %916 = vrot.lane.b32.xlu1 %v914_v61, %s2247_s4 }
 0x9db   :  { %v893_v2 = vpop.permute.xlu0 %892 }
 0x9dc   :  { %v2532_v60 = vadd.f32 %v893_v2, %v885_v63  ;;  %v2039_v63 = vld [vmem:[%s2785_s2 + $0x8] sm:$0xff]   ;;  %v2040_v2 = vld [vmem:[%s2785_s2] sm:$0xff]  }
 0x9de   :  { %2111 = vtanh.f32 %v2532_v60 }
 0x9eb   :  { %v2112_v34 = vpop.eup %2111 }
 0x9ec   :  { %898 = vrot.lane.b32.xlu0 %v2112_v34, %s2246_s0  ;;  %v2041_v34 = vld [vmem:[%s2786_s3 + $0x8] sm:$0xff]  }
 0x9f7   :  { %v917_v5 = vpop.permute.xlu1 %916 }
 0x9f8   :  { %v2537_v6 = vadd.f32 %v917_v5, %v909_v4  ;;  %v2042_v4 = vld [vmem:[%s2786_s3] sm:$0xff]  }
 0x9fa   :  { %2113 = vtanh.f32 %v2537_v6 }
 0xa07   :  { %v2114_v0 = vpop.eup %2113 }
 0xa08   :  { %922 = vrot.lane.b32.xlu1 %v2114_v0, %s2246_s0 }
 0xa5e   :  { %v899_v11 = vpop.permute.xlu0 %898 }
 0xa5f   :  { %v2557_v12 = vmul.f32 %v2106_v53, %v899_v11 }
 0xa61   :  { %v939_v13 = vpack.c.bf16 %v2557_v12, %v2557_v12 }
 0xa63   :  { %945 = vrot.lane.b32.xlu0 %v939_v13, %s2247_s4 }
 0xa7a   :  { %v923_v14 = vpop.permute.xlu1 %922 }
 0xa7b   :  { %v2562_v15 = vmul.f32 %v2110_v57, %v923_v14 }
 0xa7d   :  { %v1004_v16 = vpack.c.bf16 %v2562_v15, %v2562_v15 }
 0xa7f   :  { %1010 = vrot.lane.b32.xlu1 %v1004_v16, %s2247_s4 }
 0xad5   :  { %v946_v17 = vpop.permute.xlu0 %945 }
 0xad6   :  { %1946 = vmatmul.mubr.msk.bf16.vlgmr.msra.gmra.mxu0 %vm184_vm2, %v946_v17 }
 0xad7   :  { %1961 = vmatprep.mubr.msk.bf16.mxu0 %vm2245_vm0, %v2243_v1  ;;  %1958 = vmatpush3.bf16.msra.mxu0 %v2039_v63 }
 0xad8   :  { %1959 = vmatprep.subr.bf16.mxu0 %v2243_v1 }
 0xadb   :  { %1960 = vmatpush3.bf16.msra.mxu0 %v2040_v2 }
 0xadc   :  { %1973 = vmatprep.subr.bf16.mxu0 %v2243_v1 }
 0xaf1   :  { %v1011_v18 = vpop.permute.xlu1 %1010 }
 0xaf2   :  { %1954 = vmatmul.mubr.msk.bf16.vlgmr.msra.gmra.mxu1 %vm184_vm2, %v1011_v18 }
 0xaf3   :  { %1969 = vmatprep.mubr.msk.bf16.mxu1 %vm2245_vm0, %v2243_v1  ;;  %1966 = vmatpush3.bf16.msra.mxu1 %v2041_v34 }
 0xaf4   :  { %1967 = vmatprep.subr.bf16.mxu1 %v2243_v1 }
 0xaf7   :  { %1968 = vmatpush3.bf16.msra.mxu1 %v2042_v4 }
 0xaf8   :  { %1981 = vmatprep.subr.bf16.mxu1 %v2243_v1 }
 0xb96   :  { %v996_v20 = vpop.f32.mrf.mxu0 }
 0xb97   :  { %v1002_v21 = vadd.f32 %v996_v20, %v2371_v52 }
 0xb98   :  { %v1947_v23 = vpop.f32.mrf.mxu0 }
 0xb99   :  { %2115 = vtanh.f32 %v1002_v21  ;;  %v1803_v41 = vmul.f32 -1.442695, %v1002_v21 }
 0xb9a   :  { %v999_v24 = vpop.f32.mrf.mxu0 }
 0xb9c   :  { %v1948_v25 = vpop.f32.mrf.mxu0 }
 0xba6   :  { %v2116_v27 = vpop.eup %2115 }
 0xba7   :  { %1077 = vrot.lane.b32.xlu0 %v2116_v27, %s2246_s0 }
 0xbb2   :  { %v1061_v28 = vpop.f32.mrf.mxu1 }
 0xbb3   :  { %v1067_v31 = vadd.f32 %v1061_v28, %v2369_v49 }
 0xbb4   :  { %v1955_v33 = vpop.f32.mrf.mxu1 }
 0xbb5   :  { %2117 = vtanh.f32 %v1067_v31  ;;  %v1804_v44 = vmul.f32 -1.442695, %v1067_v31 }
 0xbb6   :  { %v1064_v35 = vpop.f32.mrf.mxu1  ;;  %2119 = vpow2.f32 %v1803_v41 }
 0xbb8   :  { %v1956_v38 = vpop.f32.mrf.mxu1 }
 0xbc2   :  { %v2118_v39 = vpop.eup %2117 }
 0xbc3   :  { %1101 = vrot.lane.b32.xlu1 %v2118_v39, %s2246_s0  ;;  %v2120_v52 = vpop.eup %2119 }
 0xbc4   :  { %v1071_v42 = vadd.f32 1.0, %v2120_v52 }
 0xbc6   :  { %2121 = vrcp.f32 %v1071_v42 }
 0xbc7   :  { %2123 = vpow2.f32 %v1804_v44 }
 0xbd3   :  { %v2122_v45 = vpop.eup %2121 }
 0xbd4   :  { %v2124_v49 = vpop.eup %2123  ;;  %v1075_v54 = vmul.f32 %v2122_v45, %v2532_v60 }
 0xbd5   :  { %v1095_v46 = vadd.f32 1.0, %v2124_v49 }
 0xbd7   :  { %2125 = vrcp.f32 %v1095_v46 }
 0xbe4   :  { %v2126_v50 = vpop.eup %2125 }
 0xbe5   :  { %v1099_v57 = vmul.f32 %v2126_v50, %v2537_v6 }
 0xc19   :  { %v1078_v47 = vpop.permute.xlu0 %1077 }
 0xc1a   :  { %v1080_v48 = vmul.f32 %v2122_v45, %v1078_v47 }
 0xc1c   :  { %1082 = vrot.lane.b32.xlu0 %v1080_v48, %s2247_s4 }
 0xc35   :  { %v1102_v51 = vpop.permute.xlu1 %1101 }
 0xc36   :  { %v1104_v53 = vmul.f32 %v2126_v50, %v1102_v51 }
 0xc38   :  { %1106 = vrot.lane.b32.xlu1 %v1104_v53, %s2247_s4 }
 0xc8e   :  { %v1083_v55 = vpop.permute.xlu0 %1082 }
 0xc8f   :  { %v2580_v56 = vadd.f32 %v1083_v55, %v1075_v54  ;;  %v2043_v54 = vld [vmem:[%s2785_s2 + $0x8] sm:$0xff]   ;;  %v2044_v55 = vld [vmem:[%s2785_s2] sm:$0xff]  }
 0xc91   :  { %2127 = vtanh.f32 %v2580_v56 }
 0xc9e   :  { %v2128_v40 = vpop.eup %2127 }
 0xc9f   :  { %1088 = vrot.lane.b32.xlu0 %v2128_v40, %s2246_s0  ;;  %v2045_v40 = vld [vmem:[%s2786_s3 + $0x8] sm:$0xff]  }
 0xcaa   :  { %v1107_v59 = vpop.permute.xlu1 %1106 }
 0xcab   :  { %v2585_v61 = vadd.f32 %v1107_v59, %v1099_v57  ;;  %v2046_v57 = vld [vmem:[%s2786_s3] sm:$0xff]  }
 0xcad   :  { %2129 = vtanh.f32 %v2585_v61 }
 0xcba   :  { %v2130_v60 = vpop.eup %2129 }
 0xcbb   :  { %1112 = vrot.lane.b32.xlu1 %v2130_v60, %s2246_s0 }
 0xd11   :  { %v1089_v5 = vpop.permute.xlu0 %1088 }
 0xd12   :  { %v2605_v6 = vmul.f32 %v2122_v45, %v1089_v5 }
 0xd14   :  { %v1127_v7 = vpack.c.bf16 %v2605_v6, %v2605_v6 }
 0xd16   :  { %1133 = vrot.lane.b32.xlu0 %v1127_v7, %s2247_s4 }
 0xd2d   :  { %v1113_v8 = vpop.permute.xlu1 %1112 }
 0xd2e   :  { %v2610_v0 = vmul.f32 %v2126_v50, %v1113_v8 }
 0xd30   :  { %v1192_v9 = vpack.c.bf16 %v2610_v0, %v2610_v0 }
 0xd32   :  { %1198 = vrot.lane.b32.xlu1 %v1192_v9, %s2247_s4 }
 0xd88   :  { %v1134_v10 = vpop.permute.xlu0 %1133 }
 0xd89   :  { %1962 = vmatmul.mubr.msk.bf16.vlgmr.msra.gmra.mxu0 %vm184_vm2, %v1134_v10 }
 0xd8a   :  { %1977 = vmatprep.mubr.msk.bf16.mxu0 %vm2245_vm0, %v2243_v1  ;;  %1974 = vmatpush3.bf16.msra.mxu0 %v2043_v54 }
 0xd8b   :  { %1975 = vmatprep.subr.bf16.mxu0 %v2243_v1 }
 0xd8e   :  { %1976 = vmatpush3.bf16.msra.mxu0 %v2044_v55 }
 0xd8f   :  { %1989 = vmatprep.subr.bf16.mxu0 %v2243_v1 }
 0xda4   :  { %v1199_v11 = vpop.permute.xlu1 %1198 }
 0xda5   :  { %1970 = vmatmul.mubr.msk.bf16.vlgmr.msra.gmra.mxu1 %vm184_vm2, %v1199_v11 }
 0xda6   :  { %1985 = vmatprep.mubr.msk.bf16.mxu1 %vm2245_vm0, %v2243_v1  ;;  %1982 = vmatpush3.bf16.msra.mxu1 %v2045_v40 }
 0xda7   :  { %1983 = vmatprep.subr.bf16.mxu1 %v2243_v1 }
 0xdaa   :  { %1984 = vmatpush3.bf16.msra.mxu1 %v2046_v57 }
 0xdab   :  { %1997 = vmatprep.subr.bf16.mxu1 %v2243_v1 }
 0xe49   :  { %v1184_v13 = vpop.f32.mrf.mxu0 }
 0xe4a   :  { %v1190_v14 = vadd.f32 %v1184_v13, %v2376_v58 }
 0xe4b   :  { %v1963_v16 = vpop.f32.mrf.mxu0 }
 0xe4c   :  { %2131 = vtanh.f32 %v1190_v14  ;;  %v1811_v31 = vmul.f32 -1.442695, %v1190_v14 }
 0xe4d   :  { %v1187_v17 = vpop.f32.mrf.mxu0 }
 0xe4f   :  { %v1964_v18 = vpop.f32.mrf.mxu0 }
 0xe59   :  { %v2132_v20 = vpop.eup %2131 }
 0xe5a   :  { %1265 = vrot.lane.b32.xlu0 %v2132_v20, %s2246_s0 }
 0xe65   :  { %v1249_v21 = vpop.f32.mrf.mxu1 }
 0xe66   :  { %v1255_v23 = vadd.f32 %v1249_v21, %v2365_v43 }
 0xe67   :  { %v1971_v24 = vpop.f32.mrf.mxu1 }
 0xe68   :  { %2133 = vtanh.f32 %v1255_v23  ;;  %v1812_v35 = vmul.f32 -1.442695, %v1255_v23 }
 0xe69   :  { %v1252_v25 = vpop.f32.mrf.mxu1  ;;  %2135 = vpow2.f32 %v1811_v31 }
 0xe6b   :  { %v1972_v27 = vpop.f32.mrf.mxu1 }
 0xe75   :  { %v2134_v28 = vpop.eup %2133 }
 0xe76   :  { %1289 = vrot.lane.b32.xlu1 %v2134_v28, %s2246_s0  ;;  %v2136_v58 = vpop.eup %2135 }
 0xe77   :  { %v1259_v33 = vadd.f32 1.0, %v2136_v58 }
 0xe79   :  { %2137 = vrcp.f32 %v1259_v33 }
 0xe7a   :  { %2139 = vpow2.f32 %v1812_v35 }
 0xe86   :  { %v2138_v38 = vpop.eup %2137 }
 0xe87   :  { %v2140_v43 = vpop.eup %2139  ;;  %v1263_v47 = vmul.f32 %v2138_v38, %v2580_v56 }
 0xe88   :  { %v1283_v52 = vadd.f32 1.0, %v2140_v43 }
 0xe8a   :  { %2141 = vrcp.f32 %v1283_v52 }
 0xe97   :  { %v2142_v42 = vpop.eup %2141 }
 0xe98   :  { %v1287_v50 = vmul.f32 %v2142_v42, %v2585_v61 }
 0xecc   :  { %v1266_v39 = vpop.permute.xlu0 %1265 }
 0xecd   :  { %v1268_v41 = vmul.f32 %v2138_v38, %v1266_v39 }
 0xecf   :  { %1270 = vrot.lane.b32.xlu0 %v1268_v41, %s2247_s4 }
 0xee8   :  { %v1290_v44 = vpop.permute.xlu1 %1289 }
 0xee9   :  { %v1292_v45 = vmul.f32 %v2142_v42, %v1290_v44 }
 0xeeb   :  { %1294 = vrot.lane.b32.xlu1 %v1292_v45, %s2247_s4 }
 0xf41   :  { %v1271_v48 = vpop.permute.xlu0 %1270 }
 0xf42   :  { %v2628_v49 = vadd.f32 %v1271_v48, %v1263_v47  ;;  %v2047_v47 = vld [vmem:[%s2785_s2 + $0x8] sm:$0xff]   ;;  %v2048_v48 = vld [vmem:[%s2785_s2] sm:$0xff]   ;;  %s2248_s2 = smov 96  }
 0xf44   :  { %2143 = vtanh.f32 %v2628_v49 }
 0xf51   :  { %v2144_v46 = vpop.eup %2143 }
 0xf52   :  { %1276 = vrot.lane.b32.xlu0 %v2144_v46, %s2246_s0  ;;  %v2049_v46 = vld [vmem:[%s2786_s3 + $0x8] sm:$0xff]  }
 0xf5d   :  { %v1295_v51 = vpop.permute.xlu1 %1294 }
 0xf5e   :  { %v2633_v53 = vadd.f32 %v1295_v51, %v1287_v50  ;;  %v2050_v50 = vld [vmem:[%s2786_s3] sm:$0xff]   ;;  %s2249_s3 = smov [#allocation5]  }
 0xf60   :  { %2145 = vtanh.f32 %v2633_v53 }
 0xf6d   :  { %v2146_v56 = vpop.eup %2145 }
 0xf6e   :  { %1300 = vrot.lane.b32.xlu1 %v2146_v56, %s2246_s0 }
 0xfc4   :  { %v1277_v59 = vpop.permute.xlu0 %1276 }
 0xfc5   :  { %v2653_v61 = vmul.f32 %v2138_v38, %v1277_v59 }
 0xfc7   :  { %v1315_v63 = vpack.c.bf16 %v2653_v61, %v2653_v61 }
 0xfc9   :  { %1321 = vrot.lane.b32.xlu0 %v1315_v63, %s2247_s4 }
 0xfe0   :  { %v1301_v2 = vpop.permute.xlu1 %1300 }
 0xfe1   :  { %v2658_v60 = vmul.f32 %v2142_v42, %v1301_v2 }
 0xfe3   :  { %v1380_v34 = vpack.c.bf16 %v2658_v60, %v2658_v60 }
 0xfe5   :  { %1386 = vrot.lane.b32.xlu1 %v1380_v34, %s2247_s4 }
0x103b   :  { %v1322_v4 = vpop.permute.xlu0 %1321 }
0x103c   :  { %1978 = vmatmul.mubr.msk.bf16.vlgmr.msra.gmra.mxu0 %vm184_vm2, %v1322_v4 }
0x103d   :  { %1993 = vmatprep.mubr.msk.bf16.mxu0 %vm2245_vm0, %v2243_v1  ;;  %1990 = vmatpush3.bf16.msra.mxu0 %v2047_v47 }
0x103e   :  { %1991 = vmatprep.subr.bf16.mxu0 %v2243_v1 }
0x1041   :  { %1992 = vmatpush3.bf16.msra.mxu0 %v2048_v48 }
0x1057   :  { %v1387_v5 = vpop.permute.xlu1 %1386 }
0x1058   :  { %1986 = vmatmul.mubr.msk.bf16.vlgmr.msra.gmra.mxu1 %vm184_vm2, %v1387_v5 }
0x1059   :  { %2001 = vmatprep.mubr.msk.bf16.mxu1 %vm2245_vm0, %v2243_v1  ;;  %1998 = vmatpush3.bf16.msra.mxu1 %v2049_v46 }
0x105a   :  { %1999 = vmatprep.subr.bf16.mxu1 %v2243_v1 }
0x105d   :  { %2000 = vmatpush3.bf16.msra.mxu1 %v2050_v50 }
0x10fc   :  { %v1372_v7 = vpop.f32.mrf.mxu0 }
0x10fd   :  { %v1378_v8 = vadd.f32 %v1372_v7, %v2380_v62 }
0x10fe   :  { %v1979_v9 = vpop.f32.mrf.mxu0 }
0x10ff   :  { %2147 = vtanh.f32 %v1378_v8  ;;  %v1819_v23 = vmul.f32 -1.442695, %v1378_v8 }
0x1100   :  { %v1375_v10 = vpop.f32.mrf.mxu0 }
0x1102   :  { %v1980_v11 = vpop.f32.mrf.mxu0 }
0x110c   :  { %v2148_v13 = vpop.eup %2147 }
0x110d   :  { %1453 = vrot.lane.b32.xlu0 %v2148_v13, %s2246_s0 }
0x1118   :  { %v1437_v14 = vpop.f32.mrf.mxu1 }
0x1119   :  { %v1443_v16 = vadd.f32 %v1437_v14, %v2361_v37 }
0x111a   :  { %v1987_v17 = vpop.f32.mrf.mxu1 }
0x111b   :  { %2149 = vtanh.f32 %v1443_v16  ;;  %v1820_v25 = vmul.f32 -1.442695, %v1443_v16 }
0x111c   :  { %v1440_v18 = vpop.f32.mrf.mxu1  ;;  %2151 = vpow2.f32 %v1819_v23 }
0x111e   :  { %v1988_v20 = vpop.f32.mrf.mxu1 }
0x1128   :  { %v2150_v21 = vpop.eup %2149 }
0x1129   :  { %1477 = vrot.lane.b32.xlu1 %v2150_v21, %s2246_s0  ;;  %v2152_v62 = vpop.eup %2151 }
0x112a   :  { %v1447_v24 = vadd.f32 1.0, %v2152_v62 }
0x112c   :  { %2153 = vrcp.f32 %v1447_v24 }
0x112d   :  { %2155 = vpow2.f32 %v1820_v25 }
0x1139   :  { %v2154_v27 = vpop.eup %2153 }
0x113a   :  { %v2156_v37 = vpop.eup %2155  ;;  %v1451_v39 = vmul.f32 %v2154_v27, %v2628_v49 }
0x113b   :  { %v1471_v58 = vadd.f32 1.0, %v2156_v37 }
0x113d   :  { %2157 = vrcp.f32 %v1471_v58 }
0x114a   :  { %v2158_v33 = vpop.eup %2157 }
0x114b   :  { %v1475_v42 = vmul.f32 %v2158_v33, %v2633_v53 }
0x117f   :  { %v1454_v28 = vpop.permute.xlu0 %1453 }
0x1180   :  { %v1456_v31 = vmul.f32 %v2154_v27, %v1454_v28 }
0x1182   :  { %1458 = vrot.lane.b32.xlu0 %v1456_v31, %s2247_s4 }
0x119b   :  { %v1478_v35 = vpop.permute.xlu1 %1477 }
0x119c   :  { %v1480_v38 = vmul.f32 %v2158_v33, %v1478_v35 }
0x119e   :  { %1482 = vrot.lane.b32.xlu1 %v1480_v38, %s2247_s4 }
0x11f4   :  { %v1459_v41 = vpop.permute.xlu0 %1458 }
0x11f5   :  { %v2676_v43 = vadd.f32 %v1459_v41, %v1451_v39 }
0x11f7   :  { %2159 = vtanh.f32 %v2676_v43 }
0x1204   :  { %v2160_v52 = vpop.eup %2159 }
0x1205   :  { %1464 = vrot.lane.b32.xlu0 %v2160_v52, %s2246_s0 }
0x1210   :  { %v1483_v44 = vpop.permute.xlu1 %1482 }
0x1211   :  { %v2681_v45 = vadd.f32 %v1483_v44, %v1475_v42 }
0x1213   :  { %2161 = vtanh.f32 %v2681_v45 }
0x1220   :  { %v2162_v49 = vpop.eup %2161 }
0x1221   :  { %1488 = vrot.lane.b32.xlu1 %v2162_v49, %s2246_s0 }
0x1277   :  { %v1465_v51 = vpop.permute.xlu0 %1464 }
0x1278   :  { %v1467_v53 = vmul.f32 %v2154_v27, %v1465_v51 }
0x127a   :  { %v1503_v54 = vpack.c.bf16 %v1467_v53, %v1467_v53 }
0x127c   :  { %1509 = vrot.lane.b32.xlu0 %v1503_v54, %s2247_s4 }
0x1293   :  { %v1489_v55 = vpop.permute.xlu1 %1488 }
0x1294   :  { %v2700_v56 = vmul.f32 %v2158_v33, %v1489_v55 }
0x1296   :  { %v1568_v40 = vpack.c.bf16 %v2700_v56, %v2700_v56 }
0x1298   :  { %1574 = vrot.lane.b32.xlu1 %v1568_v40, %s2247_s4 }
0x12ee   :  { %v1510_v57 = vpop.permute.xlu0 %1509 }
0x12ef   :  { %1994 = vmatmul.mubr.msk.bf16.vlgmr.msra.gmra.mxu0 %vm184_vm2, %v1510_v57 }
0x130a   :  { %v1575_v59 = vpop.permute.xlu1 %1574 }
0x130b   :  { %2002 = vmatmul.mubr.msk.bf16.vlgmr.msra.gmra.mxu1 %vm184_vm2, %v1575_v59 }
0x13af   :  { %v1560_v1 = vpop.f32.mrf.mxu0 }
0x13b0   :  { %v1566_v63 = vadd.f32 %v1560_v1, %v2384_v3 }
0x13b1   :  { %v1995_v2 = vpop.f32.mrf.mxu0 }
0x13b2   :  { %2163 = vtanh.f32 %v1566_v63  ;;  %v1827_v14 = vmul.f32 -1.442695, %v1566_v63 }
0x13b3   :  { %v1563_v34 = vpop.f32.mrf.mxu0 }
0x13b5   :  { %v1996_v4 = vpop.f32.mrf.mxu0 }
0x13bf   :  { %v2164_v5 = vpop.eup %2163 }
0x13c0   :  { %1641 = vrot.lane.b32.xlu0 %v2164_v5, %s2246_s0 }
0x13cb   :  { %v1625_v7 = vpop.f32.mrf.mxu1 }
0x13cc   :  { %v1631_v8 = vadd.f32 %v1625_v7, %v2357_v30 }
0x13cd   :  { %v2003_v9 = vpop.f32.mrf.mxu1 }
0x13ce   :  { %2165 = vtanh.f32 %v1631_v8  ;;  %v1828_v17 = vmul.f32 -1.442695, %v1631_v8 }
0x13cf   :  { %v1628_v10 = vpop.f32.mrf.mxu1  ;;  %2167 = vpow2.f32 %v1827_v14 }
0x13d1   :  { %v2004_v11 = vpop.f32.mrf.mxu1 }
0x13db   :  { %v2166_v13 = vpop.eup %2165 }
0x13dc   :  { %1665 = vrot.lane.b32.xlu1 %v2166_v13, %s2246_s0  ;;  %v2168_v3 = vpop.eup %2167 }
0x13dd   :  { %v1635_v16 = vadd.f32 1.0, %v2168_v3 }
0x13df   :  { %2169 = vrcp.f32 %v1635_v16 }
0x13e0   :  { %2171 = vpow2.f32 %v1828_v17 }
0x13ec   :  { %v2170_v18 = vpop.eup %2169 }
0x13ed   :  { %v2172_v30 = vpop.eup %2171  ;;  %v1639_v27 = vmul.f32 %v2170_v18, %v2676_v43 }
0x13ee   :  { %v1659_v23 = vadd.f32 1.0, %v2172_v30 }
0x13f0   :  { %2173 = vrcp.f32 %v1659_v23 }
0x13fd   :  { %v2174_v62 = vpop.eup %2173 }
0x13fe   :  { %v1663_v58 = vmul.f32 %v2174_v62, %v2681_v45 }
0x1432   :  { %v1642_v20 = vpop.permute.xlu0 %1641 }
0x1433   :  { %v1644_v21 = vmul.f32 %v2170_v18, %v1642_v20 }
0x1435   :  { %1646 = vrot.lane.b32.xlu0 %v1644_v21, %s2247_s4 }
0x144e   :  { %v1666_v24 = vpop.permute.xlu1 %1665 }
0x144f   :  { %v1668_v25 = vmul.f32 %v2174_v62, %v1666_v24 }
0x1451   :  { %1670 = vrot.lane.b32.xlu1 %v1668_v25, %s2247_s4 }
0x14a7   :  { %v1647_v28 = vpop.permute.xlu0 %1646 }
0x14a8   :  { %v1649_v31 = vadd.f32 %v1647_v28, %v1639_v27 }
0x14aa   :  { %2175 = vtanh.f32 %v1649_v31 }
0x14b7   :  { %v2176_v37 = vpop.eup %2175 }
0x14b8   :  { %1652 = vrot.lane.b32.xlu0 %v2176_v37, %s2246_s0 }
0x14bc   :  { %339 = vrot.lane.b32.xlu0 %v2405_v32, %s2247_s4 }
0x14c0   :  { %535 = vrot.lane.b32.xlu0 %v2461_v26, %s2247_s4 }
0x14c3   :  { %v1671_v33 = vpop.permute.xlu1 %1670 }
0x14c4   :  { %731 = vrot.lane.b32.xlu0 %v2509_v19, %s2247_s4  ;;  %v1673_v35 = vadd.f32 %v1671_v33, %v1663_v58 }
0x14c6   :  { %2177 = vtanh.f32 %v1673_v35 }
0x14c8   :  { %927 = vrot.lane.b32.xlu0 %v2557_v12, %s2247_s4 }
0x14cc   :  { %1117 = vrot.lane.b32.xlu0 %v2605_v6, %s2247_s4 }
0x14d0   :  { %1305 = vrot.lane.b32.xlu0 %v2653_v61, %s2247_s4 }
0x14d3   :  { %v2178_v32 = vpop.eup %2177 }
0x14d4   :  { %1493 = vrot.lane.b32.xlu0 %v1467_v53, %s2247_s4  ;;  %1676 = vrot.lane.b32.xlu1 %v2178_v32, %s2246_s0 }
0x14d8   :  { %344 = vrot.lane.b32.xlu1 %v2410_v36, %s2246_s0 }
0x14dc   :  { %541 = vrot.lane.b32.xlu1 %v2466_v29, %s2246_s0 }
0x14e0   :  { %737 = vrot.lane.b32.xlu1 %v2514_v22, %s2246_s0 }
0x14e4   :  { %933 = vrot.lane.b32.xlu1 %v2562_v15, %s2246_s0 }
0x14e8   :  { %1122 = vrot.lane.b32.xlu1 %v2610_v0, %s2246_s0 }
0x14ec   :  { %1310 = vrot.lane.b32.xlu1 %v2658_v60, %s2246_s0 }
0x14f0   :  { %1498 = vrot.lane.b32.xlu1 %v2700_v56, %s2246_s0 }
0x152a   :  { %v1653_v26 = vpop.permute.xlu0 %1652 }
0x152b   :  { %v1655_v36 = vmul.f32 %v2170_v18, %v1653_v26 }
0x152d   :  { %1681 = vrot.lane.b32.xlu0 %v1655_v36, %s2247_s4 }
0x152e   :  { %v340_v29 = vpop.permute.xlu0 %339 }
0x152f   :  { %342 = vst.msk [vmem:[#allocation3] sm:$0xff] %vm184_vm2, %v340_v29 }
0x1532   :  { %v536_v19 = vpop.permute.xlu0 %535 }
0x1533   :  { %539 = vst.msk [vmem:[#allocation3 + $0x8] sm:$0xff] %vm184_vm2, %v536_v19 }
0x1536   :  { %v732_v22 = vpop.permute.xlu0 %731 }
0x1537   :  { %735 = vst.msk [vmem:[#allocation3 + $0x10] sm:$0xff] %vm184_vm2, %v732_v22 }
0x153a   :  { %v928_v12 = vpop.permute.xlu0 %927 }
0x153b   :  { %931 = vst.msk [vmem:[#allocation3 + $0x18] sm:$0xff] %vm184_vm2, %v928_v12 }
0x153e   :  { %v1118_v15 = vpop.permute.xlu0 %1117 }
0x1542   :  { %v1306_v61 = vpop.permute.xlu0 %1305 }
0x1546   :  { %v1677_v6 = vpop.permute.xlu1 %1676  ;;  %v1494_v39 = vpop.permute.xlu0 %1493 }
0x1547   :  { %v1679_v0 = vmul.f32 %v2174_v62, %v1677_v6 }
0x1549   :  { %1686 = vrot.lane.b32.xlu0 %v1679_v0, %s2246_s0  ;;  %1691 = vrot.lane.b32.xlu1 %v1679_v0, %s2247_s4  ;;  %s1724_s0 = sshll.u32 %s2249_s3, 4  ;;  %s2250_s4 = smov [#allocation3]   ;;  %s1725_s0 = int_to_ptr.vmem [resolvable:$true] %s1724_s0 }
0x154a   :  { %v345_v60 = vpop.permute.xlu1 %344  ;;  %s1712_s14 = sshll.u32 %s2250_s4, 4  ;;  %s2179_s17 = scalar_lea.vmem %s1725_s0, 256  ;;  %s1713_s14 = int_to_ptr.vmem [resolvable:$true] %s1712_s14 }
0x154b   :  { %349 = vst.msk [vmem:[#allocation3 + $0x38] sm:$0xff] %vm348_vm3, %v345_v60  ;;  %p2180_p0 = scmp.ne.s32.totalorder %s1725_s0, %s2179_s17  ;;  %p2184_p1 = scmp.lt.s32.totalorder %s1725_s0, %s1725_s0 }
0x154c   :  { %p2185_p2 = scmp.lt.s32.totalorder %s2179_s17, %s2179_s17 }
0x154d   :  { %1702 = vrot.lane.b32.xlu0 %v1673_v35, %s2248_s2  ;;  %1697 = vrot.lane.b32.xlu1 %v1649_v31, %s2248_s2 }
0x154e   :  { %v542_v38 = vpop.permute.xlu1 %541  ;;  %p2186_p3 = por %p2185_p2, %p2184_p1 }
0x154f   :  { %545 = vst.msk [vmem:[#allocation3 + $0x30] sm:$0xff] %vm348_vm3, %v542_v38 }
0x1550   :  { %1496 = vst.msk [vmem:[#allocation3 + $0x30] sm:$0xff] %vm184_vm2, %v1494_v39  ;;  %p2187_p4 = pnand %p2186_p3, %p2180_p0 }
0x1552   :  { %v738_v41 = vpop.permute.xlu1 %737 }
0x1553   :  { %741 = vst.msk [vmem:[#allocation3 + $0x28] sm:$0xff] %vm348_vm3, %v738_v41 }
0x1554   :  { %1308 = vst.msk [vmem:[#allocation3 + $0x28] sm:$0xff] %vm184_vm2, %v1306_v61 }
0x1556   :  { %v934_v43 = vpop.permute.xlu1 %933 }
0x1557   :  { %937 = vst.msk [vmem:[#allocation3 + $0x20] sm:$0xff] %vm348_vm3, %v934_v43 }
0x1558   :  { %1120 = vst.msk [vmem:[#allocation3 + $0x20] sm:$0xff] %vm184_vm2, %v1118_v15 }
0x155a   :  { %v1123_v52 = vpop.permute.xlu1 %1122 }
0x155b   :  { %1125 = vst.msk [vmem:[#allocation3 + $0x18] sm:$0xff] %vm348_vm3, %v1123_v52 }
0x155e   :  { %v1311_v42 = vpop.permute.xlu1 %1310 }
0x155f   :  { %1313 = vst.msk [vmem:[#allocation3 + $0x10] sm:$0xff] %vm348_vm3, %v1311_v42 }
0x1562   :  { %v1499_v44 = vpop.permute.xlu1 %1498 }
0x1563   :  { %1501 = vst.msk [vmem:[#allocation3 + $0x8] sm:$0xff] %vm348_vm3, %v1499_v44 }
0x159f   :  { %v1682_v45 = vpop.permute.xlu0 %1681 }
0x15a0   :  { %1684 = vst.msk [vmem:[#allocation3 + $0x38] sm:$0xff] %vm184_vm2, %v1682_v45  ;;  %1690 = vst.msk [vmem:[#allocation5] sm:$0xff] %vm184_vm2, %v1682_v45 }
0x15bb   :  { %v1687_v47 = vpop.permute.xlu0 %1686  ;;  %v1692_v48 = vpop.permute.xlu1 %1691 }
0x15bc   :  { %1689 = vst.msk [vmem:[#allocation3] sm:$0xff] %vm348_vm3, %v1687_v47 }
0x15bd   :  { %1695 = vst.msk [vmem:[#allocation5 + $0x8] sm:$0xff] %vm184_vm2, %v1692_v48 }
0x15be   :  { %2190 = shalt.err (!%p2187_p4)
}
0x15bf   :  { %s2252_s18 = smov 128   ;;  %s2253_s19 = smov 8  }
0x15c0   :  { %1730 = dma.vmem_to_hbm [thread:$0]  %s1725_s0, 256, %s2789_s6, [#allocation6], %s2252_s18, %s2252_s18, %s2253_s19  }
0x15c1   :  { %s2199_s22 = scalar_lea.vmem %s1713_s14, 1024  ;;  %p2204_p6 = scmp.lt.s32.totalorder %s1713_s14, %s1713_s14 }
0x15c2   :  { %p2200_p5 = scmp.ne.s32.totalorder %s1713_s14, %s2199_s22  ;;  %p2205_p7 = scmp.lt.s32.totalorder %s2199_s22, %s2199_s22 }
0x15c4   :  { %p2206_p8 = por %p2205_p7, %p2204_p6 }
0x15c6   :  { %p2207_p9 = pnand %p2206_p8, %p2200_p5 }
0x15c8   :  { %2210 = shalt.err (!%p2207_p9)
}
0x15c9   :  { %1718 = dma.vmem_to_hbm [thread:$0]  %s1713_s14, 1024, %s2788_s5, [#allocation4], %s2252_s18, %s2252_s18, %s2253_s19   ;;  %v1703_v49 = vpop.permute.xlu0 %1702  ;;  %v1698_v46 = vpop.permute.xlu1 %1697 }
0x15ca   :  { %1706 = vst.msk [vmem:[#allocation7 + $0x8] sm:$0xff] %vm184_vm2, %v1703_v49  ;;  %1700 = vst.msk [vmem:[#allocation7] sm:$0xff] %vm184_vm2, %v1698_v46  ;;  %s2219_s6 = scalar_lea.vmem %s2765_s16, 256  ;;  %p2224_p11 = scmp.lt.s32.totalorder %s2765_s16, %s2765_s16 }
0x15cb   :  { %p2220_p10 = scmp.ne.s32.totalorder %s2765_s16, %s2219_s6  ;;  %p2225_p12 = scmp.lt.s32.totalorder %s2219_s6, %s2219_s6 }
0x15cd   :  { %p2226_p13 = por %p2225_p12, %p2224_p11 }
0x15cf   :  { %p2227_p0 = pnand %p2226_p13, %p2220_p10 }
0x15d1   :  { %2230 = shalt.err (!%p2227_p0)
}
0x15d2   :  { %1742 = dma.vmem_to_hbm [thread:$0]  %s2765_s16, 256, %s2790_s7, [#allocation6], %s2252_s18, %s2252_s18, %s2253_s19  }
0x15d3   :  { %2239 = dma.done.wait [#allocation4], 1024  }
0x15d4   :  { %2240 = vsyncadd [#allocation4], 4294966272 }
0x15d5   :  { %2241 = dma.done.wait [#allocation6], 512  }
0x15d6   :  { %2242 = vsyncadd [#allocation6], 4294966784 }
0x15d7   :  { %1752 = vsyncpa [#allocation4], 1 }
0x15d8   :  { %1753 = vsyncpa [#allocation6], 1 }

</bundles_post_ra>
